<compile_context>
chip_gen: v7x
topology: tpu7x:2x2x1
jax: 0.10.0
libtpu: 0.0.40
codegen_flags: <defaults>
</compile_context>

<pallas_src>
import functools

import jax
import jax.numpy as jnp
from jax import lax
from jax.experimental import pallas as pl
from jax.experimental.pallas import tpu as pltpu


def _log_sigmoid(x):
    # numerically stable logsigmoid(x) = min(x, 0) - log(1 + exp(-|x|))
    return jnp.minimum(x, 0.0) - jnp.log(1.0 + jnp.exp(-jnp.abs(x)))


def _mlstm_kernel(q_ref, k_ref, v_ref, w_ref, b_ref, o_ref, *, kv_block):
    """One grid step: a block of Bt batch elements, all heads, full sequence."""
    f32 = jnp.float32
    Bt, S, E = q_ref.shape
    _, NH, _, DH = o_ref.shape
    KV = kv_block
    n_kv = S // KV

    w = w_ref[...]            # (3E, 2NH) inputs' dtype; [:, :NH]=igate, [:, NH:]=fgate
    bias = b_ref[...]         # (1, 2NH)  f32

    # Causal helpers rebuilt in-kernel from iota (no resident (S,S) mask inputs).
    row_s = lax.broadcasted_iota(jnp.int32, (S, S), 0)
    col_s = lax.broadcasted_iota(jnp.int32, (S, S), 1)
    tri = (col_s <= row_s).astype(f32)          # inclusive lower-triangular ones
    row_kv = lax.broadcasted_iota(jnp.int32, (S, KV), 0)
    col_kv = lax.broadcasted_iota(jnp.int32, (S, KV), 1)

    # Tiny identity used to transpose (S, NH) -> (NH, S) with one MXU push
    # (negligible FLOPs at these shapes; see module-level TODO for production).
    eye_nh = (lax.broadcasted_iota(jnp.int32, (NH, NH), 0)
              == lax.broadcasted_iota(jnp.int32, (NH, NH), 1)).astype(f32)

    inv_sqrt_dh = 1.0 / (float(DH) ** 0.5)
    eps = 1e-6        # matches the PyTorch module
    gn_eps = 1e-5     # F.group_norm default
    NEG = -1e30

    @pl.loop(0, Bt)   # scf.for over batch elements: bounds vreg live ranges
    def _batch(b):
        qb = q_ref[b]                                      # (S, E) native dtype
        kb = k_ref[b]
        vb = v_ref[b]

        # Fused i/f gate projection (native-dtype MXU operands, f32 accumulate).
        gates = (jnp.dot(qb, w[:E], preferred_element_type=f32)
                 + jnp.dot(kb, w[E:2 * E], preferred_element_type=f32)
                 + jnp.dot(vb, w[2 * E:], preferred_element_type=f32)
                 + bias)                                   # (S, 2NH) f32
        ig = gates[:, :NH]                                 # input-gate preact
        lf = _log_sigmoid(gates[:, NH:])                   # log forget gates
        # Inclusive cumulative sum over the sequence for all heads at once.
        # Kept in f32: it is a length-S reduction feeding exp() and its FLOPs
        # are negligible next to the attention matmuls.
        cs = jnp.dot(tri, lf, preferred_element_type=f32)  # (S, NH)
        # a[j, h] = ig[j, h] - cs[j, h], transposed so it row-broadcasts (VPU).
        a_t = lax.dot_general(eye_nh, ig - cs, (((1,), (1,)), ((), ())),
                              preferred_element_type=f32)  # (NH, S)

        for h in range(NH):
            cs_col = cs[:, h:h + 1]                        # (S, 1)
            qh = qb[:, h * DH:(h + 1) * DH]                # (S, DH) native

            # Flash-style scan over KV chunks with a running row-max (m), signed
            # row-sum (l) and numerator (acc); only (S, KV) temps are live.
            m = jnp.full((S, 1), NEG, f32)
            l = jnp.zeros((S, 1), f32)
            acc = jnp.zeros((S, DH), f32)
            for c in range(n_kv):
                j0 = c * KV
                kc = kb[j0:j0 + KV, h * DH:(h + 1) * DH]   # (KV, DH) native
                vc = vb[j0:j0 + KV, h * DH:(h + 1) * DH]
                neg = jnp.where(j0 + col_kv <= row_kv, 0.0, NEG)
                # log_D[i, j] = cs[i] + (ig[j] - cs[j]), causally masked.
                log_D = cs_col + a_t[h:h + 1, j0:j0 + KV] + neg     # (S, KV)
                m_new = jnp.maximum(m, jnp.max(log_D, axis=-1, keepdims=True))
                rescale = jnp.exp(m - m_new)
                D = jnp.exp(log_D - m_new)
                # q @ k^T in native dtype, f32 accumulate (1/sqrt(DH) is folded
                # into the final per-row scale instead of pre-scaling k).
                qk = lax.dot_general(qh, kc, (((1,), (1,)), ((), ())),
                                     preferred_element_type=f32)    # (S, KV)
                C = qk * D
                l = rescale * l + jnp.sum(C, axis=-1, keepdims=True)
                acc = rescale * acc + jnp.dot(C.astype(vc.dtype), vc,
                                              preferred_element_type=f32)
                m = m_new

            normalizer = jnp.maximum(jnp.abs(l) * inv_sqrt_dh, jnp.exp(-m))
            # Row normalization + 1/sqrt(DH) as one approximate EUP reciprocal.
            # Safe only because the following group norm cancels any per-row
            # scale (up to gn_eps); keep this invariant in mind when editing.
            scale = inv_sqrt_dh * pl.reciprocal(normalizer + eps, approx=True)
            h_tilde = acc * scale                          # (S, DH)

            # MultiHeadLayerNorm == group_norm over DH per (head, position),
            # no affine parameters (F.group_norm called without weight/bias).
            mean = jnp.mean(h_tilde, axis=-1, keepdims=True)
            var = jnp.mean((h_tilde - mean) ** 2, axis=-1, keepdims=True)
            h_norm = (h_tilde - mean) * lax.rsqrt(var + gn_eps)

            # Lane width is DH: full-lane unmasked stores at production DH=128;
            # masked (but tiny) at the demo DH.
            o_ref[b, h, :, :] = h_norm.astype(o_ref.dtype)


def _vmem_capacity_bytes():
    try:
        return int(pltpu.get_tpu_info().vmem_capacity_bytes)
    except Exception:          # non-TPU tracing / field mismatch: conservative
        return 64 * 1024 * 1024


def _step_footprint_bytes(bt, S, E, NH, DH, kv, in_itemsize, out_itemsize):
    """Rough per-grid-step VMEM footprint: double-buffered IO + in-kernel temps."""
    io = 3 * 2 * bt * S * E * in_itemsize             # q, k, v (double buffered)
    io += 2 * bt * NH * S * DH * out_itemsize         # output  (double buffered)
    io += 2 * ((3 * E) * (2 * NH) * in_itemsize + 2 * NH * 4)   # weights + bias
    tmp = S * S * 4                                   # in-kernel tri
    tmp += 6 * S * 2 * NH * 4                         # gates / lf / cs / a_t ...
    tmp += (6 * S * kv + 4 * S * DH + 8 * S) * 4      # per-head flash working set
    return io + tmp


def _pick_batch_block(B, S, E, NH, DH, kv, in_itemsize, out_itemsize, budget):
    divisors = [d for d in range(1, B + 1) if B % d == 0]
    fits = [d for d in divisors
            if _step_footprint_bytes(d, S, E, NH, DH, kv,
                                     in_itemsize, out_itemsize) <= budget]
    if not fits:
        return 1
    # Prefer >= 2 grid steps so v7x megacore can shard the parallel batch axis.
    multi = [d for d in fits if B // d >= 2]
    return max(multi) if multi else max(fits)


def mlstm_forward(q, k, v, w_igate, b_igate, w_fgate, b_fgate, num_heads,
                  batch_block=None, kv_block=None):
    """q, k, v: (B, S, E) in their native dtype (f32 or bf16).
    w_*: (NH, 3E) nn.Linear weights; b_*: (NH,) biases."""
    B, S, E = q.shape
    NH = num_heads
    assert E % NH == 0
    DH = E // NH

    if kv_block is None:
        kv_block = min(S, 512)
        while S % kv_block:
            kv_block -= 1
    assert S % kv_block == 0

    in_itemsize = jnp.dtype(q.dtype).itemsize
    out_itemsize = in_itemsize
    cap = _vmem_capacity_bytes()
    budget = int(cap * 0.7)
    Bt = (_pick_batch_block(B, S, E, NH, DH, kv_block, in_itemsize,
                            out_itemsize, budget)
          if batch_block is None else batch_block)
    assert B % Bt == 0
    footprint = _step_footprint_bytes(Bt, S, E, NH, DH, kv_block,
                                      in_itemsize, out_itemsize)
    vmem_limit = int(min(int(0.9 * cap), max(32 * 1024 * 1024, 2 * footprint)))

    # Fused gate parameters: two Linear(3E -> NH) -> one (3E, 2NH) weight in the
    # inputs' dtype (single-pass bf16 MXU when inputs are bf16) + an f32 bias.
    w_fused = jnp.concatenate(
        [jnp.transpose(w_igate), jnp.transpose(w_fgate)], axis=1).astype(q.dtype)
    b_fused = jnp.concatenate([b_igate, b_fgate]).reshape(1, 2 * NH).astype(
        jnp.float32)

    kernel = functools.partial(_mlstm_kernel, kv_block=kv_block)

    h_norm = pl.pallas_call(
        kernel,
        out_shape=jax.ShapeDtypeStruct((B, NH, S, DH), q.dtype),
        grid_spec=pltpu.PrefetchScalarGridSpec(
            num_scalar_prefetch=0,
            grid=(B // Bt,),
            in_specs=[
                pl.BlockSpec((Bt, S, E), lambda i: (i, 0, 0)),       # q
                pl.BlockSpec((Bt, S, E), lambda i: (i, 0, 0)),       # k
                pl.BlockSpec((Bt, S, E), lambda i: (i, 0, 0)),       # v
                pl.BlockSpec((3 * E, 2 * NH), lambda i: (0, 0)),     # fused W
                pl.BlockSpec((1, 2 * NH), lambda i: (0, 0)),         # fused bias
            ],
            out_specs=pl.BlockSpec((Bt, NH, S, DH), lambda i: (i, 0, 0, 0)),
        ),
        compiler_params=pltpu.CompilerParams(
            dimension_semantics=("parallel",),
            vmem_limit_bytes=vmem_limit,
        ),
    )(q, k, v, w_fused, b_fused)

    # Module output == row-major flatten of the head-major (B, NH, S, DH) tensor
    # (the two transposes around MultiHeadLayerNorm cancel).  Free reshape.
    return h_norm.reshape(B, S, NH * DH)


def reference_forward(q, k, v, w_igate, b_igate, w_fgate, b_fgate,
                      num_heads, context_length):
    """Plain-JAX literal translation of the PyTorch module (ground truth)."""
    B, S, E = q.shape
    NH = num_heads
    DH = E // NH
    gate_in = jnp.concatenate([q, k, v], axis=-1)                 # (B, S, 3E)
    ig = gate_in @ w_igate.T + b_igate                            # (B, S, NH)
    fg = gate_in @ w_fgate.T + b_fgate
    qh = q.reshape(B, S, NH, DH).transpose(0, 2, 1, 3)            # (B, NH, S, DH)
    kh = k.reshape(B, S, NH, DH).transpose(0, 2, 1, 3)
    vh = v.reshape(B, S, NH, DH).transpose(0, 2, 1, 3)
    ig_p = ig.transpose(0, 2, 1)[..., None]                       # (B, NH, S, 1)
    fg_p = fg.transpose(0, 2, 1)[..., None]

    lf = _log_sigmoid(fg_p)
    cs = jnp.concatenate(
        [jnp.zeros((B, NH, 1, 1), lf.dtype), jnp.cumsum(lf, axis=-2)], axis=-2)
    rep = jnp.tile(cs, (1, 1, 1, S + 1))
    log_fg_full = rep - jnp.swapaxes(rep, -2, -1)
    mask = jnp.tril(jnp.ones((context_length, context_length), bool))
    log_fg_mat = jnp.where(mask, log_fg_full[:, :, 1:, 1:], -jnp.inf)
    log_D = log_fg_mat + jnp.swapaxes(ig_p, -2, -1)
    max_log_D = jnp.max(log_D, axis=-1, keepdims=True)
    D = jnp.exp(log_D - max_log_D)
    ks = kh / (DH ** 0.5)
    qk = qh @ jnp.swapaxes(ks, -2, -1)
    C = qk * D
    normalizer = jnp.maximum(jnp.abs(jnp.sum(C, axis=-1, keepdims=True)),
                             jnp.exp(-max_log_D))
    Cn = C / (normalizer + 1e-6)
    h = Cn @ vh                                                   # (B, NH, S, DH)
    mean = jnp.mean(h, axis=-1, keepdims=True)
    var = jnp.mean((h - mean) ** 2, axis=-1, keepdims=True)
    hn = (h - mean) / jnp.sqrt(var + 1e-5)
    # module: outnorm(h).transpose(1,2).reshape(B,S,-1) == flatten of (B,NH,S,DH)
    return hn.reshape(B, S, NH * DH)


if __name__ == "__main__":
    # Shapes consistent with the module: it asserts context_length <= B and
    # broadcasts a (context_length, context_length) mask against (S, S), so we
    # use context_length == S == 16 and B == 16.
    B, S, E, NH = 16, 16, 32, 4
    context_length = S

    key = jax.random.PRNGKey(0)
    kq, kk, kv_, kwi, kbi, kwf, kbf = jax.random.split(key, 7)
    q = jax.random.normal(kq, (B, S, E), jnp.float32)
    k = jax.random.normal(kk, (B, S, E), jnp.float32)
    v = jax.random.normal(kv_, (B, S, E), jnp.float32)
    # nn.Linear(3E -> NH) shaped parameters.
    w_igate = 0.1 * jax.random.normal(kwi, (NH, 3 * E), jnp.float32)
    b_igate = 0.1 * jax.random.normal(kbi, (NH,), jnp.float32)
    w_fgate = 0.1 * jax.random.normal(kwf, (NH, 3 * E), jnp.float32)
    b_fgate = jax.random.normal(kbf, (NH,), jnp.float32)

    ref = reference_forward(q, k, v, w_igate, b_igate, w_fgate, b_fgate,
                            NH, context_length)

    # f32 run with kv_block < S: exercises the flash-style KV-chunking path.
    out = mlstm_forward(q, k, v, w_igate, b_igate, w_fgate, b_fgate, NH,
                        kv_block=8)
    out = jax.block_until_ready(out)
    assert out.shape == (B, S, E), out.shape
    if not jnp.allclose(out, ref, atol=3e-3, rtol=3e-3):
        max_err = float(jnp.max(jnp.abs(out - ref)))
        raise AssertionError(f"f32 kernel/reference mismatch, max_abs_err={max_err}")

    # bf16 run (single-pass native-dtype MXU path).  Loose bound vs the f32
    # reference: the output is group-normalized (unit scale), so a layout or
    # ordering bug shows up as O(1) errors while honest bf16 rounding stays
    # well below this threshold.
    out_bf16 = mlstm_forward(q.astype(jnp.bfloat16), k.astype(jnp.bfloat16),
                             v.astype(jnp.bfloat16), w_igate, b_igate,
                             w_fgate, b_fgate, NH)
    out_bf16 = jax.block_until_ready(out_bf16)
    bf16_err = float(jnp.max(jnp.abs(out_bf16.astype(jnp.float32) - ref)))
    if not (bf16_err < 0.5):
        raise AssertionError(
            f"bf16 kernel/reference mismatch, max_abs_err={bf16_err}")

    print("KERNEL_OK")
</pallas_src>

<mosaic_0001>
module attributes {stable_mosaic.version = 11 : i64} {
  func.func @_mlstm_kernel(%arg0: i32, %arg1: memref<8x16x32xf32, #tpu.memory_space<vmem>>, %arg2: memref<8x16x32xf32, #tpu.memory_space<vmem>>, %arg3: memref<8x16x32xf32, #tpu.memory_space<vmem>>, %arg4: memref<96x8xf32, #tpu.memory_space<vmem>>, %arg5: memref<1x8xf32, #tpu.memory_space<vmem>>, %arg6: memref<8x4x16x8xf32, #tpu.memory_space<vmem>>) attributes {dimension_semantics = [#tpu.dimension_semantics<parallel>], iteration_bounds = array<i64: 2>, scalar_prefetch = 0 : i64, scratch_operands = 0 : i64, tpu.core_type = #tpu.core_type<tc>, window_params = [{transform_indices = @transform_0, window_bounds = array<i64: 8, 16, 32>}, {transform_indices = @transform_1, window_bounds = array<i64: 8, 16, 32>}, {transform_indices = @transform_2, window_bounds = array<i64: 8, 16, 32>}, {pipeline_mode = #tpu.pipeline_mode<synchronous>, transform_indices = @transform_3, window_bounds = array<i64: 96, 8>}, {pipeline_mode = #tpu.pipeline_mode<synchronous>, transform_indices = @transform_4, window_bounds = array<i64: 1, 8>}, {transform_indices = @transform_5, window_bounds = array<i64: 8, 4, 16, 8>}]} {
    %c0 = arith.constant 0 : index
    %c0_0 = arith.constant 0 : index
    %0 = vector.load %arg4[%c0, %c0_0] : memref<96x8xf32, #tpu.memory_space<vmem>>, vector<96x8xf32>
    %c0_1 = arith.constant 0 : index
    %c0_2 = arith.constant 0 : index
    %1 = vector.load %arg5[%c0_1, %c0_2] : memref<1x8xf32, #tpu.memory_space<vmem>>, vector<1x8xf32>
    %2 = tpu.iota {dimensions = array<i32: 0>} : vector<16x16xi32>
    %3 = tpu.iota {dimensions = array<i32: 1>} : vector<16x16xi32>
    %4 = arith.cmpi sle, %3, %2 : vector<16x16xi32>
    %5 = arith.extui %4 : vector<16x16xi1> to vector<16x16xi32>
    %6 = arith.sitofp %5 : vector<16x16xi32> to vector<16x16xf32>
    %7 = tpu.iota {dimensions = array<i32: 0>} : vector<16x8xi32>
    %8 = tpu.iota {dimensions = array<i32: 1>} : vector<16x8xi32>
    %9 = tpu.iota {dimensions = array<i32: 0>} : vector<4x4xi32>
    %10 = tpu.iota {dimensions = array<i32: 1>} : vector<4x4xi32>
    %11 = arith.cmpi eq, %9, %10 : vector<4x4xi32>
    %12 = arith.extui %11 : vector<4x4xi1> to vector<4x4xi32>
    %13 = arith.sitofp %12 : vector<4x4xi32> to vector<4x4xf32>
    %c0_i32 = arith.constant 0 : i32
    %c8_i32 = arith.constant 8 : i32
    %14 = arith.addi %c0_i32, %c8_i32 : i32
    %c1_i32 = arith.constant 1 : i32
    scf.for %arg7 = %c0_i32 to %14 step %c1_i32  : i32 {
      %c1_i32_4 = arith.constant 1 : i32
      %15 = arith.muli %arg7, %c1_i32_4 : i32
      %c0_i32_5 = arith.constant 0 : i32
      %16 = arith.addi %c0_i32_5, %15 : i32
      %17 = arith.index_cast %16 : i32 to index
      %c0_6 = arith.constant 0 : index
      %c0_7 = arith.constant 0 : index
      %18 = vector.load %arg1[%17, %c0_6, %c0_7] : memref<8x16x32xf32, #tpu.memory_space<vmem>>, vector<1x16x32xf32>
      %19 = vector.shape_cast %18 : vector<1x16x32xf32> to vector<16x32xf32>
      %20 = arith.index_cast %16 : i32 to index
      %c0_8 = arith.constant 0 : index
      %c0_9 = arith.constant 0 : index
      %21 = vector.load %arg2[%20, %c0_8, %c0_9] : memref<8x16x32xf32, #tpu.memory_space<vmem>>, vector<1x16x32xf32>
      %22 = vector.shape_cast %21 : vector<1x16x32xf32> to vector<16x32xf32>
      %23 = arith.index_cast %16 : i32 to index
      %c0_10 = arith.constant 0 : index
      %c0_11 = arith.constant 0 : index
      %24 = vector.load %arg3[%23, %c0_10, %c0_11] : memref<8x16x32xf32, #tpu.memory_space<vmem>>, vector<1x16x32xf32>
      %25 = vector.shape_cast %24 : vector<1x16x32xf32> to vector<16x32xf32>
      %26 = vector.extract_strided_slice %0 {offsets = [0, 0], sizes = [32, 8], strides = [1, 1]} : vector<96x8xf32> to vector<32x8xf32>
      %cst = arith.constant dense<0.000000e+00> : vector<16x8xf32>
      %27 = tpu.matmul %19, %26, %cst {dimension_numbers = #tpu.dot_dimension_numbers<[1], [0], [0], [1], [0, 0, 1, 1], [], []>} : vector<16x32xf32>, vector<32x8xf32>, vector<16x8xf32> -> vector<16x8xf32>
      %28 = vector.extract_strided_slice %0 {offsets = [32, 0], sizes = [32, 8], strides = [1, 1]} : vector<96x8xf32> to vector<32x8xf32>
      %cst_12 = arith.constant dense<0.000000e+00> : vector<16x8xf32>
      %29 = tpu.matmul %22, %28, %cst_12 {dimension_numbers = #tpu.dot_dimension_numbers<[1], [0], [0], [1], [0, 0, 1, 1], [], []>} : vector<16x32xf32>, vector<32x8xf32>, vector<16x8xf32> -> vector<16x8xf32>
      %30 = arith.addf %27, %29 : vector<16x8xf32>
      %31 = vector.extract_strided_slice %0 {offsets = [64, 0], sizes = [32, 8], strides = [1, 1]} : vector<96x8xf32> to vector<32x8xf32>
      %cst_13 = arith.constant dense<0.000000e+00> : vector<16x8xf32>
      %32 = tpu.matmul %25, %31, %cst_13 {dimension_numbers = #tpu.dot_dimension_numbers<[1], [0], [0], [1], [0, 0, 1, 1], [], []>} : vector<16x32xf32>, vector<32x8xf32>, vector<16x8xf32> -> vector<16x8xf32>
      %33 = arith.addf %30, %32 : vector<16x8xf32>
      %34 = vector.broadcast %1 : vector<1x8xf32> to vector<16x8xf32>
      %35 = arith.addf %33, %34 : vector<16x8xf32>
      %36 = vector.extract_strided_slice %35 {offsets = [0, 0], sizes = [16, 4], strides = [1, 1]} : vector<16x8xf32> to vector<16x4xf32>
      %37 = vector.extract_strided_slice %35 {offsets = [0, 4], sizes = [16, 4], strides = [1, 1]} : vector<16x8xf32> to vector<16x4xf32>
      %cst_14 = arith.constant 0.000000e+00 : f32
      %38 = vector.broadcast %cst_14 : f32 to vector<16x4xf32>
      %39 = arith.minimumf %37, %38 : vector<16x4xf32>
      %40 = math.absf %37 : vector<16x4xf32>
      %cst_15 = arith.constant 0.000000e+00 : f32
      %41 = vector.broadcast %cst_15 : f32 to vector<16x4xf32>
      %42 = arith.subf %41, %40 : vector<16x4xf32>
      %43 = math.exp %42 : vector<16x4xf32>
      %cst_16 = arith.constant 1.000000e+00 : f32
      %44 = vector.broadcast %cst_16 : f32 to vector<16x4xf32>
      %45 = arith.addf %44, %43 : vector<16x4xf32>
      %46 = math.log %45 : vector<16x4xf32>
      %47 = arith.subf %39, %46 : vector<16x4xf32>
      %cst_17 = arith.constant dense<0.000000e+00> : vector<16x4xf32>
      %48 = tpu.matmul %6, %47, %cst_17 {dimension_numbers = #tpu.dot_dimension_numbers<[1], [0], [0], [1], [0, 0, 1, 1], [], []>} : vector<16x16xf32>, vector<16x4xf32>, vector<16x4xf32> -> vector<16x4xf32>
      %49 = arith.subf %36, %48 : vector<16x4xf32>
      %cst_18 = arith.constant dense<0.000000e+00> : vector<4x16xf32>
      %50 = tpu.matmul %13, %49, %cst_18 {dimension_numbers = #tpu.dot_dimension_numbers<[1], [1], [0], [0], [0, 0, 1, 0], [], []>} : vector<4x4xf32>, vector<16x4xf32>, vector<4x16xf32> -> vector<4x16xf32>
      %51 = vector.extract_strided_slice %48 {offsets = [0, 0], sizes = [16, 1], strides = [1, 1]} : vector<16x4xf32> to vector<16x1xf32>
      %52 = vector.extract_strided_slice %19 {offsets = [0, 0], sizes = [16, 8], strides = [1, 1]} : vector<16x32xf32> to vector<16x8xf32>
      %cst_19 = arith.constant -1.000000e+30 : f32
      %53 = vector.broadcast %cst_19 : f32 to vector<16x1xf32>
      %cst_20 = arith.constant 0.000000e+00 : f32
      %54 = vector.broadcast %cst_20 : f32 to vector<16x1xf32>
      %cst_21 = arith.constant 0.000000e+00 : f32
      %55 = vector.broadcast %cst_21 : f32 to vector<16x8xf32>
      %56 = vector.extract_strided_slice %22 {offsets = [0, 0], sizes = [8, 8], strides = [1, 1]} : vector<16x32xf32> to vector<8x8xf32>
      %57 = vector.extract_strided_slice %25 {offsets = [0, 0], sizes = [8, 8], strides = [1, 1]} : vector<16x32xf32> to vector<8x8xf32>
      %c0_i32_22 = arith.constant 0 : i32
      %58 = vector.broadcast %c0_i32_22 : i32 to vector<16x8xi32>
      %59 = arith.addi %58, %8 : vector<16x8xi32>
      %60 = arith.cmpi sle, %59, %7 : vector<16x8xi32>
      %cst_23 = arith.constant 0.000000e+00 : f32
      %cst_24 = arith.constant -1.000000e+30 : f32
      %61 = vector.broadcast %cst_23 : f32 to vector<16x8xf32>
      %62 = vector.broadcast %cst_24 : f32 to vector<16x8xf32>
      %63 = arith.select %60, %61, %62 : vector<16x8xi1>, vector<16x8xf32>
      %64 = vector.extract_strided_slice %50 {offsets = [0, 0], sizes = [1, 8], strides = [1, 1]} : vector<4x16xf32> to vector<1x8xf32>
      %65 = vector.broadcast %51 : vector<16x1xf32> to vector<16x8xf32>
      %66 = vector.broadcast %64 : vector<1x8xf32> to vector<16x8xf32>
      %67 = arith.addf %65, %66 : vector<16x8xf32>
      %68 = arith.addf %67, %63 : vector<16x8xf32>
      %cst_25 = arith.constant dense<0xFF800000> : vector<16xf32>
      %69 = vector.multi_reduction <maximumf>, %68, %cst_25 [1] : vector<16x8xf32> to vector<16xf32>
      %70 = vector.shape_cast %69 : vector<16xf32> to vector<16x1xf32>
      %71 = arith.maximumf %53, %70 : vector<16x1xf32>
      %72 = arith.subf %53, %71 : vector<16x1xf32>
      %73 = math.exp %72 : vector<16x1xf32>
      %74 = vector.broadcast %71 : vector<16x1xf32> to vector<16x8xf32>
      %75 = arith.subf %68, %74 : vector<16x8xf32>
      %76 = math.exp %75 : vector<16x8xf32>
      %cst_26 = arith.constant dense<0.000000e+00> : vector<16x8xf32>
      %77 = tpu.matmul %52, %56, %cst_26 {dimension_numbers = #tpu.dot_dimension_numbers<[1], [1], [0], [0], [0, 0, 1, 0], [], []>} : vector<16x8xf32>, vector<8x8xf32>, vector<16x8xf32> -> vector<16x8xf32>
      %78 = arith.mulf %77, %76 : vector<16x8xf32>
      %79 = arith.mulf %73, %54 : vector<16x1xf32>
      %cst_27 = arith.constant dense<0.000000e+00> : vector<16xf32>
      %80 = vector.multi_reduction <add>, %78, %cst_27 [1] : vector<16x8xf32> to vector<16xf32>
      %81 = vector.shape_cast %80 : vector<16xf32> to vector<16x1xf32>
      %82 = arith.addf %79, %81 : vector<16x1xf32>
      %83 = vector.broadcast %73 : vector<16x1xf32> to vector<16x8xf32>
      %84 = arith.mulf %83, %55 : vector<16x8xf32>
      %cst_28 = arith.constant dense<0.000000e+00> : vector<16x8xf32>
      %85 = tpu.matmul %78, %57, %cst_28 {dimension_numbers = #tpu.dot_dimension_numbers<[1], [0], [0], [1], [0, 0, 1, 1], [], []>} : vector<16x8xf32>, vector<8x8xf32>, vector<16x8xf32> -> vector<16x8xf32>
      %86 = arith.addf %84, %85 : vector<16x8xf32>
      %87 = vector.extract_strided_slice %22 {offsets = [8, 0], sizes = [8, 8], strides = [1, 1]} : vector<16x32xf32> to vector<8x8xf32>
      %88 = vector.extract_strided_slice %25 {offsets = [8, 0], sizes = [8, 8], strides = [1, 1]} : vector<16x32xf32> to vector<8x8xf32>
      %c8_i32_29 = arith.constant 8 : i32
      %89 = vector.broadcast %c8_i32_29 : i32 to vector<16x8xi32>
      %90 = arith.addi %89, %8 : vector<16x8xi32>
      %91 = arith.cmpi sle, %90, %7 : vector<16x8xi32>
      %cst_30 = arith.constant 0.000000e+00 : f32
      %cst_31 = arith.constant -1.000000e+30 : f32
      %92 = vector.broadcast %cst_30 : f32 to vector<16x8xf32>
      %93 = vector.broadcast %cst_31 : f32 to vector<16x8xf32>
      %94 = arith.select %91, %92, %93 : vector<16x8xi1>, vector<16x8xf32>
      %95 = vector.extract_strided_slice %50 {offsets = [0, 8], sizes = [1, 8], strides = [1, 1]} : vector<4x16xf32> to vector<1x8xf32>
      %96 = vector.broadcast %51 : vector<16x1xf32> to vector<16x8xf32>
      %97 = vector.broadcast %95 : vector<1x8xf32> to vector<16x8xf32>
      %98 = arith.addf %96, %97 : vector<16x8xf32>
      %99 = arith.addf %98, %94 : vector<16x8xf32>
      %cst_32 = arith.constant dense<0xFF800000> : vector<16xf32>
      %100 = vector.multi_reduction <maximumf>, %99, %cst_32 [1] : vector<16x8xf32> to vector<16xf32>
      %101 = vector.shape_cast %100 : vector<16xf32> to vector<16x1xf32>
      %102 = arith.maximumf %71, %101 : vector<16x1xf32>
      %103 = arith.subf %71, %102 : vector<16x1xf32>
      %104 = math.exp %103 : vector<16x1xf32>
      %105 = vector.broadcast %102 : vector<16x1xf32> to vector<16x8xf32>
      %106 = arith.subf %99, %105 : vector<16x8xf32>
      %107 = math.exp %106 : vector<16x8xf32>
      %cst_33 = arith.constant dense<0.000000e+00> : vector<16x8xf32>
      %108 = tpu.matmul %52, %87, %cst_33 {dimension_numbers = #tpu.dot_dimension_numbers<[1], [1], [0], [0], [0, 0, 1, 0], [], []>} : vector<16x8xf32>, vector<8x8xf32>, vector<16x8xf32> -> vector<16x8xf32>
      %109 = arith.mulf %108, %107 : vector<16x8xf32>
      %110 = arith.mulf %104, %82 : vector<16x1xf32>
      %cst_34 = arith.constant dense<0.000000e+00> : vector<16xf32>
      %111 = vector.multi_reduction <add>, %109, %cst_34 [1] : vector<16x8xf32> to vector<16xf32>
      %112 = vector.shape_cast %111 : vector<16xf32> to vector<16x1xf32>
      %113 = arith.addf %110, %112 : vector<16x1xf32>
      %114 = vector.broadcast %104 : vector<16x1xf32> to vector<16x8xf32>
      %115 = arith.mulf %114, %86 : vector<16x8xf32>
      %cst_35 = arith.constant dense<0.000000e+00> : vector<16x8xf32>
      %116 = tpu.matmul %109, %88, %cst_35 {dimension_numbers = #tpu.dot_dimension_numbers<[1], [0], [0], [1], [0, 0, 1, 1], [], []>} : vector<16x8xf32>, vector<8x8xf32>, vector<16x8xf32> -> vector<16x8xf32>
      %117 = arith.addf %115, %116 : vector<16x8xf32>
      %118 = math.absf %113 : vector<16x1xf32>
      %cst_36 = arith.constant 0.353553385 : f32
      %119 = vector.broadcast %cst_36 : f32 to vector<16x1xf32>
      %120 = arith.mulf %118, %119 : vector<16x1xf32>
      %cst_37 = arith.constant 0.000000e+00 : f32
      %121 = vector.broadcast %cst_37 : f32 to vector<16x1xf32>
      %122 = arith.subf %121, %102 : vector<16x1xf32>
      %123 = math.exp %122 : vector<16x1xf32>
      %124 = arith.maximumf %120, %123 : vector<16x1xf32>
      %cst_38 = arith.constant 9.99999997E-7 : f32
      %125 = vector.broadcast %cst_38 : f32 to vector<16x1xf32>
      %126 = arith.addf %124, %125 : vector<16x1xf32>
      %127 = tpu.reciprocal %126 {approx = true} : vector<16x1xf32> -> vector<16x1xf32>
      %cst_39 = arith.constant 0.353553385 : f32
      %128 = vector.broadcast %cst_39 : f32 to vector<16x1xf32>
      %129 = arith.mulf %128, %127 : vector<16x1xf32>
      %130 = vector.broadcast %129 : vector<16x1xf32> to vector<16x8xf32>
      %131 = arith.mulf %117, %130 : vector<16x8xf32>
      %cst_40 = arith.constant dense<0.000000e+00> : vector<16xf32>
      %132 = vector.multi_reduction <add>, %131, %cst_40 [1] : vector<16x8xf32> to vector<16xf32>
      %133 = vector.shape_cast %132 : vector<16xf32> to vector<16x1xf32>
      %cst_41 = arith.constant 8.000000e+00 : f32
      %134 = vector.broadcast %cst_41 : f32 to vector<16x1xf32>
      %135 = arith.divf %133, %134 : vector<16x1xf32>
      %136 = vector.broadcast %135 : vector<16x1xf32> to vector<16x8xf32>
      %137 = arith.subf %131, %136 : vector<16x8xf32>
      %138 = arith.mulf %137, %137 : vector<16x8xf32>
      %cst_42 = arith.constant dense<0.000000e+00> : vector<16xf32>
      %139 = vector.multi_reduction <add>, %138, %cst_42 [1] : vector<16x8xf32> to vector<16xf32>
      %140 = vector.shape_cast %139 : vector<16xf32> to vector<16x1xf32>
      %cst_43 = arith.constant 8.000000e+00 : f32
      %141 = vector.broadcast %cst_43 : f32 to vector<16x1xf32>
      %142 = arith.divf %140, %141 : vector<16x1xf32>
      %143 = vector.broadcast %135 : vector<16x1xf32> to vector<16x8xf32>
      %144 = arith.subf %131, %143 : vector<16x8xf32>
      %cst_44 = arith.constant 9.99999974E-6 : f32
      %145 = vector.broadcast %cst_44 : f32 to vector<16x1xf32>
      %146 = arith.addf %142, %145 : vector<16x1xf32>
      %147 = math.rsqrt %146 : vector<16x1xf32>
      %148 = vector.broadcast %147 : vector<16x1xf32> to vector<16x8xf32>
      %149 = arith.mulf %144, %148 : vector<16x8xf32>
      %150 = arith.index_cast %16 : i32 to index
      %c0_45 = arith.constant 0 : index
      %c0_46 = arith.constant 0 : index
      %c0_47 = arith.constant 0 : index
      %151 = vector.load %arg6[%150, %c0_45, %c0_46, %c0_47] : memref<8x4x16x8xf32, #tpu.memory_space<vmem>>, vector<1x1x16x8xf32>
      %152 = vector.shape_cast %151 : vector<1x1x16x8xf32> to vector<16x8xf32>
      %153 = vector.shape_cast %149 : vector<16x8xf32> to vector<1x1x16x8xf32>
      tpu.vector_store %arg6[%150, %c0_45, %c0_46, %c0_47], %153 {strides = array<i32>} : memref<8x4x16x8xf32, #tpu.memory_space<vmem>>, vector<1x1x16x8xf32>,
      %154 = vector.extract_strided_slice %48 {offsets = [0, 1], sizes = [16, 1], strides = [1, 1]} : vector<16x4xf32> to vector<16x1xf32>
      %155 = vector.extract_strided_slice %19 {offsets = [0, 8], sizes = [16, 8], strides = [1, 1]} : vector<16x32xf32> to vector<16x8xf32>
      %cst_48 = arith.constant -1.000000e+30 : f32
      %156 = vector.broadcast %cst_48 : f32 to vector<16x1xf32>
      %cst_49 = arith.constant 0.000000e+00 : f32
      %157 = vector.broadcast %cst_49 : f32 to vector<16x1xf32>
      %cst_50 = arith.constant 0.000000e+00 : f32
      %158 = vector.broadcast %cst_50 : f32 to vector<16x8xf32>
      %159 = vector.extract_strided_slice %22 {offsets = [0, 8], sizes = [8, 8], strides = [1, 1]} : vector<16x32xf32> to vector<8x8xf32>
      %160 = vector.extract_strided_slice %25 {offsets = [0, 8], sizes = [8, 8], strides = [1, 1]} : vector<16x32xf32> to vector<8x8xf32>
      %c0_i32_51 = arith.constant 0 : i32
      %161 = vector.broadcast %c0_i32_51 : i32 to vector<16x8xi32>
      %162 = arith.addi %161, %8 : vector<16x8xi32>
      %163 = arith.cmpi sle, %162, %7 : vector<16x8xi32>
      %cst_52 = arith.constant 0.000000e+00 : f32
      %cst_53 = arith.constant -1.000000e+30 : f32
      %164 = vector.broadcast %cst_52 : f32 to vector<16x8xf32>
      %165 = vector.broadcast %cst_53 : f32 to vector<16x8xf32>
      %166 = arith.select %163, %164, %165 : vector<16x8xi1>, vector<16x8xf32>
      %167 = vector.extract_strided_slice %50 {offsets = [1, 0], sizes = [1, 8], strides = [1, 1]} : vector<4x16xf32> to vector<1x8xf32>
      %168 = vector.broadcast %154 : vector<16x1xf32> to vector<16x8xf32>
      %169 = vector.broadcast %167 : vector<1x8xf32> to vector<16x8xf32>
      %170 = arith.addf %168, %169 : vector<16x8xf32>
      %171 = arith.addf %170, %166 : vector<16x8xf32>
      %cst_54 = arith.constant dense<0xFF800000> : vector<16xf32>
      %172 = vector.multi_reduction <maximumf>, %171, %cst_54 [1] : vector<16x8xf32> to vector<16xf32>
      %173 = vector.shape_cast %172 : vector<16xf32> to vector<16x1xf32>
      %174 = arith.maximumf %156, %173 : vector<16x1xf32>
      %175 = arith.subf %156, %174 : vector<16x1xf32>
      %176 = math.exp %175 : vector<16x1xf32>
      %177 = vector.broadcast %174 : vector<16x1xf32> to vector<16x8xf32>
      %178 = arith.subf %171, %177 : vector<16x8xf32>
      %179 = math.exp %178 : vector<16x8xf32>
      %cst_55 = arith.constant dense<0.000000e+00> : vector<16x8xf32>
      %180 = tpu.matmul %155, %159, %cst_55 {dimension_numbers = #tpu.dot_dimension_numbers<[1], [1], [0], [0], [0, 0, 1, 0], [], []>} : vector<16x8xf32>, vector<8x8xf32>, vector<16x8xf32> -> vector<16x8xf32>
      %181 = arith.mulf %180, %179 : vector<16x8xf32>
      %182 = arith.mulf %176, %157 : vector<16x1xf32>
      %cst_56 = arith.constant dense<0.000000e+00> : vector<16xf32>
      %183 = vector.multi_reduction <add>, %181, %cst_56 [1] : vector<16x8xf32> to vector<16xf32>
      %184 = vector.shape_cast %183 : vector<16xf32> to vector<16x1xf32>
      %185 = arith.addf %182, %184 : vector<16x1xf32>
      %186 = vector.broadcast %176 : vector<16x1xf32> to vector<16x8xf32>
      %187 = arith.mulf %186, %158 : vector<16x8xf32>
      %cst_57 = arith.constant dense<0.000000e+00> : vector<16x8xf32>
      %188 = tpu.matmul %181, %160, %cst_57 {dimension_numbers = #tpu.dot_dimension_numbers<[1], [0], [0], [1], [0, 0, 1, 1], [], []>} : vector<16x8xf32>, vector<8x8xf32>, vector<16x8xf32> -> vector<16x8xf32>
      %189 = arith.addf %187, %188 : vector<16x8xf32>
      %190 = vector.extract_strided_slice %22 {offsets = [8, 8], sizes = [8, 8], strides = [1, 1]} : vector<16x32xf32> to vector<8x8xf32>
      %191 = vector.extract_strided_slice %25 {offsets = [8, 8], sizes = [8, 8], strides = [1, 1]} : vector<16x32xf32> to vector<8x8xf32>
      %c8_i32_58 = arith.constant 8 : i32
      %192 = vector.broadcast %c8_i32_58 : i32 to vector<16x8xi32>
      %193 = arith.addi %192, %8 : vector<16x8xi32>
      %194 = arith.cmpi sle, %193, %7 : vector<16x8xi32>
      %cst_59 = arith.constant 0.000000e+00 : f32
      %cst_60 = arith.constant -1.000000e+30 : f32
      %195 = vector.broadcast %cst_59 : f32 to vector<16x8xf32>
      %196 = vector.broadcast %cst_60 : f32 to vector<16x8xf32>
      %197 = arith.select %194, %195, %196 : vector<16x8xi1>, vector<16x8xf32>
      %198 = vector.extract_strided_slice %50 {offsets = [1, 8], sizes = [1, 8], strides = [1, 1]} : vector<4x16xf32> to vector<1x8xf32>
      %199 = vector.broadcast %154 : vector<16x1xf32> to vector<16x8xf32>
      %200 = vector.broadcast %198 : vector<1x8xf32> to vector<16x8xf32>
      %201 = arith.addf %199, %200 : vector<16x8xf32>
      %202 = arith.addf %201, %197 : vector<16x8xf32>
      %cst_61 = arith.constant dense<0xFF800000> : vector<16xf32>
      %203 = vector.multi_reduction <maximumf>, %202, %cst_61 [1] : vector<16x8xf32> to vector<16xf32>
      %204 = vector.shape_cast %203 : vector<16xf32> to vector<16x1xf32>
      %205 = arith.maximumf %174, %204 : vector<16x1xf32>
      %206 = arith.subf %174, %205 : vector<16x1xf32>
      %207 = math.exp %206 : vector<16x1xf32>
      %208 = vector.broadcast %205 : vector<16x1xf32> to vector<16x8xf32>
      %209 = arith.subf %202, %208 : vector<16x8xf32>
      %210 = math.exp %209 : vector<16x8xf32>
      %cst_62 = arith.constant dense<0.000000e+00> : vector<16x8xf32>
      %211 = tpu.matmul %155, %190, %cst_62 {dimension_numbers = #tpu.dot_dimension_numbers<[1], [1], [0], [0], [0, 0, 1, 0], [], []>} : vector<16x8xf32>, vector<8x8xf32>, vector<16x8xf32> -> vector<16x8xf32>
      %212 = arith.mulf %211, %210 : vector<16x8xf32>
      %213 = arith.mulf %207, %185 : vector<16x1xf32>
      %cst_63 = arith.constant dense<0.000000e+00> : vector<16xf32>
      %214 = vector.multi_reduction <add>, %212, %cst_63 [1] : vector<16x8xf32> to vector<16xf32>
      %215 = vector.shape_cast %214 : vector<16xf32> to vector<16x1xf32>
      %216 = arith.addf %213, %215 : vector<16x1xf32>
      %217 = vector.broadcast %207 : vector<16x1xf32> to vector<16x8xf32>
      %218 = arith.mulf %217, %189 : vector<16x8xf32>
      %cst_64 = arith.constant dense<0.000000e+00> : vector<16x8xf32>
      %219 = tpu.matmul %212, %191, %cst_64 {dimension_numbers = #tpu.dot_dimension_numbers<[1], [0], [0], [1], [0, 0, 1, 1], [], []>} : vector<16x8xf32>, vector<8x8xf32>, vector<16x8xf32> -> vector<16x8xf32>
      %220 = arith.addf %218, %219 : vector<16x8xf32>
      %221 = math.absf %216 : vector<16x1xf32>
      %cst_65 = arith.constant 0.353553385 : f32
      %222 = vector.broadcast %cst_65 : f32 to vector<16x1xf32>
      %223 = arith.mulf %221, %222 : vector<16x1xf32>
      %cst_66 = arith.constant 0.000000e+00 : f32
      %224 = vector.broadcast %cst_66 : f32 to vector<16x1xf32>
      %225 = arith.subf %224, %205 : vector<16x1xf32>
      %226 = math.exp %225 : vector<16x1xf32>
      %227 = arith.maximumf %223, %226 : vector<16x1xf32>
      %cst_67 = arith.constant 9.99999997E-7 : f32
      %228 = vector.broadcast %cst_67 : f32 to vector<16x1xf32>
      %229 = arith.addf %227, %228 : vector<16x1xf32>
      %230 = tpu.reciprocal %229 {approx = true} : vector<16x1xf32> -> vector<16x1xf32>
      %cst_68 = arith.constant 0.353553385 : f32
      %231 = vector.broadcast %cst_68 : f32 to vector<16x1xf32>
      %232 = arith.mulf %231, %230 : vector<16x1xf32>
      %233 = vector.broadcast %232 : vector<16x1xf32> to vector<16x8xf32>
      %234 = arith.mulf %220, %233 : vector<16x8xf32>
      %cst_69 = arith.constant dense<0.000000e+00> : vector<16xf32>
      %235 = vector.multi_reduction <add>, %234, %cst_69 [1] : vector<16x8xf32> to vector<16xf32>
      %236 = vector.shape_cast %235 : vector<16xf32> to vector<16x1xf32>
      %cst_70 = arith.constant 8.000000e+00 : f32
      %237 = vector.broadcast %cst_70 : f32 to vector<16x1xf32>
      %238 = arith.divf %236, %237 : vector<16x1xf32>
      %239 = vector.broadcast %238 : vector<16x1xf32> to vector<16x8xf32>
      %240 = arith.subf %234, %239 : vector<16x8xf32>
      %241 = arith.mulf %240, %240 : vector<16x8xf32>
      %cst_71 = arith.constant dense<0.000000e+00> : vector<16xf32>
      %242 = vector.multi_reduction <add>, %241, %cst_71 [1] : vector<16x8xf32> to vector<16xf32>
      %243 = vector.shape_cast %242 : vector<16xf32> to vector<16x1xf32>
      %cst_72 = arith.constant 8.000000e+00 : f32
      %244 = vector.broadcast %cst_72 : f32 to vector<16x1xf32>
      %245 = arith.divf %243, %244 : vector<16x1xf32>
      %246 = vector.broadcast %238 : vector<16x1xf32> to vector<16x8xf32>
      %247 = arith.subf %234, %246 : vector<16x8xf32>
      %cst_73 = arith.constant 9.99999974E-6 : f32
      %248 = vector.broadcast %cst_73 : f32 to vector<16x1xf32>
      %249 = arith.addf %245, %248 : vector<16x1xf32>
      %250 = math.rsqrt %249 : vector<16x1xf32>
      %251 = vector.broadcast %250 : vector<16x1xf32> to vector<16x8xf32>
      %252 = arith.mulf %247, %251 : vector<16x8xf32>
      %253 = arith.index_cast %16 : i32 to index
      %c1 = arith.constant 1 : index
      %c0_74 = arith.constant 0 : index
      %c0_75 = arith.constant 0 : index
      %254 = vector.load %arg6[%253, %c1, %c0_74, %c0_75] : memref<8x4x16x8xf32, #tpu.memory_space<vmem>>, vector<1x1x16x8xf32>
      %255 = vector.shape_cast %254 : vector<1x1x16x8xf32> to vector<16x8xf32>
      %256 = vector.shape_cast %252 : vector<16x8xf32> to vector<1x1x16x8xf32>
      tpu.vector_store %arg6[%253, %c1, %c0_74, %c0_75], %256 {strides = array<i32>} : memref<8x4x16x8xf32, #tpu.memory_space<vmem>>, vector<1x1x16x8xf32>,
      %257 = vector.extract_strided_slice %48 {offsets = [0, 2], sizes = [16, 1], strides = [1, 1]} : vector<16x4xf32> to vector<16x1xf32>
      %258 = vector.extract_strided_slice %19 {offsets = [0, 16], sizes = [16, 8], strides = [1, 1]} : vector<16x32xf32> to vector<16x8xf32>
      %cst_76 = arith.constant -1.000000e+30 : f32
      %259 = vector.broadcast %cst_76 : f32 to vector<16x1xf32>
      %cst_77 = arith.constant 0.000000e+00 : f32
      %260 = vector.broadcast %cst_77 : f32 to vector<16x1xf32>
      %cst_78 = arith.constant 0.000000e+00 : f32
      %261 = vector.broadcast %cst_78 : f32 to vector<16x8xf32>
      %262 = vector.extract_strided_slice %22 {offsets = [0, 16], sizes = [8, 8], strides = [1, 1]} : vector<16x32xf32> to vector<8x8xf32>
      %263 = vector.extract_strided_slice %25 {offsets = [0, 16], sizes = [8, 8], strides = [1, 1]} : vector<16x32xf32> to vector<8x8xf32>
      %c0_i32_79 = arith.constant 0 : i32
      %264 = vector.broadcast %c0_i32_79 : i32 to vector<16x8xi32>
      %265 = arith.addi %264, %8 : vector<16x8xi32>
      %266 = arith.cmpi sle, %265, %7 : vector<16x8xi32>
      %cst_80 = arith.constant 0.000000e+00 : f32
      %cst_81 = arith.constant -1.000000e+30 : f32
      %267 = vector.broadcast %cst_80 : f32 to vector<16x8xf32>
      %268 = vector.broadcast %cst_81 : f32 to vector<16x8xf32>
      %269 = arith.select %266, %267, %268 : vector<16x8xi1>, vector<16x8xf32>
      %270 = vector.extract_strided_slice %50 {offsets = [2, 0], sizes = [1, 8], strides = [1, 1]} : vector<4x16xf32> to vector<1x8xf32>
      %271 = vector.broadcast %257 : vector<16x1xf32> to vector<16x8xf32>
      %272 = vector.broadcast %270 : vector<1x8xf32> to vector<16x8xf32>
      %273 = arith.addf %271, %272 : vector<16x8xf32>
      %274 = arith.addf %273, %269 : vector<16x8xf32>
      %cst_82 = arith.constant dense<0xFF800000> : vector<16xf32>
      %275 = vector.multi_reduction <maximumf>, %274, %cst_82 [1] : vector<16x8xf32> to vector<16xf32>
      %276 = vector.shape_cast %275 : vector<16xf32> to vector<16x1xf32>
      %277 = arith.maximumf %259, %276 : vector<16x1xf32>
      %278 = arith.subf %259, %277 : vector<16x1xf32>
      %279 = math.exp %278 : vector<16x1xf32>
      %280 = vector.broadcast %277 : vector<16x1xf32> to vector<16x8xf32>
      %281 = arith.subf %274, %280 : vector<16x8xf32>
      %282 = math.exp %281 : vector<16x8xf32>
      %cst_83 = arith.constant dense<0.000000e+00> : vector<16x8xf32>
      %283 = tpu.matmul %258, %262, %cst_83 {dimension_numbers = #tpu.dot_dimension_numbers<[1], [1], [0], [0], [0, 0, 1, 0], [], []>} : vector<16x8xf32>, vector<8x8xf32>, vector<16x8xf32> -> vector<16x8xf32>
      %284 = arith.mulf %283, %282 : vector<16x8xf32>
      %285 = arith.mulf %279, %260 : vector<16x1xf32>
      %cst_84 = arith.constant dense<0.000000e+00> : vector<16xf32>
      %286 = vector.multi_reduction <add>, %284, %cst_84 [1] : vector<16x8xf32> to vector<16xf32>
      %287 = vector.shape_cast %286 : vector<16xf32> to vector<16x1xf32>
      %288 = arith.addf %285, %287 : vector<16x1xf32>
      %289 = vector.broadcast %279 : vector<16x1xf32> to vector<16x8xf32>
      %290 = arith.mulf %289, %261 : vector<16x8xf32>
      %cst_85 = arith.constant dense<0.000000e+00> : vector<16x8xf32>
      %291 = tpu.matmul %284, %263, %cst_85 {dimension_numbers = #tpu.dot_dimension_numbers<[1], [0], [0], [1], [0, 0, 1, 1], [], []>} : vector<16x8xf32>, vector<8x8xf32>, vector<16x8xf32> -> vector<16x8xf32>
      %292 = arith.addf %290, %291 : vector<16x8xf32>
      %293 = vector.extract_strided_slice %22 {offsets = [8, 16], sizes = [8, 8], strides = [1, 1]} : vector<16x32xf32> to vector<8x8xf32>
      %294 = vector.extract_strided_slice %25 {offsets = [8, 16], sizes = [8, 8], strides = [1, 1]} : vector<16x32xf32> to vector<8x8xf32>
      %c8_i32_86 = arith.constant 8 : i32
      %295 = vector.broadcast %c8_i32_86 : i32 to vector<16x8xi32>
      %296 = arith.addi %295, %8 : vector<16x8xi32>
      %297 = arith.cmpi sle, %296, %7 : vector<16x8xi32>
      %cst_87 = arith.constant 0.000000e+00 : f32
      %cst_88 = arith.constant -1.000000e+30 : f32
      %298 = vector.broadcast %cst_87 : f32 to vector<16x8xf32>
      %299 = vector.broadcast %cst_88 : f32 to vector<16x8xf32>
      %300 = arith.select %297, %298, %299 : vector<16x8xi1>, vector<16x8xf32>
      %301 = vector.extract_strided_slice %50 {offsets = [2, 8], sizes = [1, 8], strides = [1, 1]} : vector<4x16xf32> to vector<1x8xf32>
      %302 = vector.broadcast %257 : vector<16x1xf32> to vector<16x8xf32>
      %303 = vector.broadcast %301 : vector<1x8xf32> to vector<16x8xf32>
      %304 = arith.addf %302, %303 : vector<16x8xf32>
      %305 = arith.addf %304, %300 : vector<16x8xf32>
      %cst_89 = arith.constant dense<0xFF800000> : vector<16xf32>
      %306 = vector.multi_reduction <maximumf>, %305, %cst_89 [1] : vector<16x8xf32> to vector<16xf32>
      %307 = vector.shape_cast %306 : vector<16xf32> to vector<16x1xf32>
      %308 = arith.maximumf %277, %307 : vector<16x1xf32>
      %309 = arith.subf %277, %308 : vector<16x1xf32>
      %310 = math.exp %309 : vector<16x1xf32>
      %311 = vector.broadcast %308 : vector<16x1xf32> to vector<16x8xf32>
      %312 = arith.subf %305, %311 : vector<16x8xf32>
      %313 = math.exp %312 : vector<16x8xf32>
      %cst_90 = arith.constant dense<0.000000e+00> : vector<16x8xf32>
      %314 = tpu.matmul %258, %293, %cst_90 {dimension_numbers = #tpu.dot_dimension_numbers<[1], [1], [0], [0], [0, 0, 1, 0], [], []>} : vector<16x8xf32>, vector<8x8xf32>, vector<16x8xf32> -> vector<16x8xf32>
      %315 = arith.mulf %314, %313 : vector<16x8xf32>
      %316 = arith.mulf %310, %288 : vector<16x1xf32>
      %cst_91 = arith.constant dense<0.000000e+00> : vector<16xf32>
      %317 = vector.multi_reduction <add>, %315, %cst_91 [1] : vector<16x8xf32> to vector<16xf32>
      %318 = vector.shape_cast %317 : vector<16xf32> to vector<16x1xf32>
      %319 = arith.addf %316, %318 : vector<16x1xf32>
      %320 = vector.broadcast %310 : vector<16x1xf32> to vector<16x8xf32>
      %321 = arith.mulf %320, %292 : vector<16x8xf32>
      %cst_92 = arith.constant dense<0.000000e+00> : vector<16x8xf32>
      %322 = tpu.matmul %315, %294, %cst_92 {dimension_numbers = #tpu.dot_dimension_numbers<[1], [0], [0], [1], [0, 0, 1, 1], [], []>} : vector<16x8xf32>, vector<8x8xf32>, vector<16x8xf32> -> vector<16x8xf32>
      %323 = arith.addf %321, %322 : vector<16x8xf32>
      %324 = math.absf %319 : vector<16x1xf32>
      %cst_93 = arith.constant 0.353553385 : f32
      %325 = vector.broadcast %cst_93 : f32 to vector<16x1xf32>
      %326 = arith.mulf %324, %325 : vector<16x1xf32>
      %cst_94 = arith.constant 0.000000e+00 : f32
      %327 = vector.broadcast %cst_94 : f32 to vector<16x1xf32>
      %328 = arith.subf %327, %308 : vector<16x1xf32>
      %329 = math.exp %328 : vector<16x1xf32>
      %330 = arith.maximumf %326, %329 : vector<16x1xf32>
      %cst_95 = arith.constant 9.99999997E-7 : f32
      %331 = vector.broadcast %cst_95 : f32 to vector<16x1xf32>
      %332 = arith.addf %330, %331 : vector<16x1xf32>
      %333 = tpu.reciprocal %332 {approx = true} : vector<16x1xf32> -> vector<16x1xf32>
      %cst_96 = arith.constant 0.353553385 : f32
      %334 = vector.broadcast %cst_96 : f32 to vector<16x1xf32>
      %335 = arith.mulf %334, %333 : vector<16x1xf32>
      %336 = vector.broadcast %335 : vector<16x1xf32> to vector<16x8xf32>
      %337 = arith.mulf %323, %336 : vector<16x8xf32>
      %cst_97 = arith.constant dense<0.000000e+00> : vector<16xf32>
      %338 = vector.multi_reduction <add>, %337, %cst_97 [1] : vector<16x8xf32> to vector<16xf32>
      %339 = vector.shape_cast %338 : vector<16xf32> to vector<16x1xf32>
      %cst_98 = arith.constant 8.000000e+00 : f32
      %340 = vector.broadcast %cst_98 : f32 to vector<16x1xf32>
      %341 = arith.divf %339, %340 : vector<16x1xf32>
      %342 = vector.broadcast %341 : vector<16x1xf32> to vector<16x8xf32>
      %343 = arith.subf %337, %342 : vector<16x8xf32>
      %344 = arith.mulf %343, %343 : vector<16x8xf32>
      %cst_99 = arith.constant dense<0.000000e+00> : vector<16xf32>
      %345 = vector.multi_reduction <add>, %344, %cst_99 [1] : vector<16x8xf32> to vector<16xf32>
      %346 = vector.shape_cast %345 : vector<16xf32> to vector<16x1xf32>
      %cst_100 = arith.constant 8.000000e+00 : f32
      %347 = vector.broadcast %cst_100 : f32 to vector<16x1xf32>
      %348 = arith.divf %346, %347 : vector<16x1xf32>
      %349 = vector.broadcast %341 : vector<16x1xf32> to vector<16x8xf32>
      %350 = arith.subf %337, %349 : vector<16x8xf32>
      %cst_101 = arith.constant 9.99999974E-6 : f32
      %351 = vector.broadcast %cst_101 : f32 to vector<16x1xf32>
      %352 = arith.addf %348, %351 : vector<16x1xf32>
      %353 = math.rsqrt %352 : vector<16x1xf32>
      %354 = vector.broadcast %353 : vector<16x1xf32> to vector<16x8xf32>
      %355 = arith.mulf %350, %354 : vector<16x8xf32>
      %356 = arith.index_cast %16 : i32 to index
      %c2 = arith.constant 2 : index
      %c0_102 = arith.constant 0 : index
      %c0_103 = arith.constant 0 : index
      %357 = vector.load %arg6[%356, %c2, %c0_102, %c0_103] : memref<8x4x16x8xf32, #tpu.memory_space<vmem>>, vector<1x1x16x8xf32>
      %358 = vector.shape_cast %357 : vector<1x1x16x8xf32> to vector<16x8xf32>
      %359 = vector.shape_cast %355 : vector<16x8xf32> to vector<1x1x16x8xf32>
      tpu.vector_store %arg6[%356, %c2, %c0_102, %c0_103], %359 {strides = array<i32>} : memref<8x4x16x8xf32, #tpu.memory_space<vmem>>, vector<1x1x16x8xf32>,
      %360 = vector.extract_strided_slice %48 {offsets = [0, 3], sizes = [16, 1], strides = [1, 1]} : vector<16x4xf32> to vector<16x1xf32>
      %361 = vector.extract_strided_slice %19 {offsets = [0, 24], sizes = [16, 8], strides = [1, 1]} : vector<16x32xf32> to vector<16x8xf32>
      %cst_104 = arith.constant -1.000000e+30 : f32
      %362 = vector.broadcast %cst_104 : f32 to vector<16x1xf32>
      %cst_105 = arith.constant 0.000000e+00 : f32
      %363 = vector.broadcast %cst_105 : f32 to vector<16x1xf32>
      %cst_106 = arith.constant 0.000000e+00 : f32
      %364 = vector.broadcast %cst_106 : f32 to vector<16x8xf32>
      %365 = vector.extract_strided_slice %22 {offsets = [0, 24], sizes = [8, 8], strides = [1, 1]} : vector<16x32xf32> to vector<8x8xf32>
      %366 = vector.extract_strided_slice %25 {offsets = [0, 24], sizes = [8, 8], strides = [1, 1]} : vector<16x32xf32> to vector<8x8xf32>
      %c0_i32_107 = arith.constant 0 : i32
      %367 = vector.broadcast %c0_i32_107 : i32 to vector<16x8xi32>
      %368 = arith.addi %367, %8 : vector<16x8xi32>
      %369 = arith.cmpi sle, %368, %7 : vector<16x8xi32>
      %cst_108 = arith.constant 0.000000e+00 : f32
      %cst_109 = arith.constant -1.000000e+30 : f32
      %370 = vector.broadcast %cst_108 : f32 to vector<16x8xf32>
      %371 = vector.broadcast %cst_109 : f32 to vector<16x8xf32>
      %372 = arith.select %369, %370, %371 : vector<16x8xi1>, vector<16x8xf32>
      %373 = vector.extract_strided_slice %50 {offsets = [3, 0], sizes = [1, 8], strides = [1, 1]} : vector<4x16xf32> to vector<1x8xf32>
      %374 = vector.broadcast %360 : vector<16x1xf32> to vector<16x8xf32>
      %375 = vector.broadcast %373 : vector<1x8xf32> to vector<16x8xf32>
      %376 = arith.addf %374, %375 : vector<16x8xf32>
      %377 = arith.addf %376, %372 : vector<16x8xf32>
      %cst_110 = arith.constant dense<0xFF800000> : vector<16xf32>
      %378 = vector.multi_reduction <maximumf>, %377, %cst_110 [1] : vector<16x8xf32> to vector<16xf32>
      %379 = vector.shape_cast %378 : vector<16xf32> to vector<16x1xf32>
      %380 = arith.maximumf %362, %379 : vector<16x1xf32>
      %381 = arith.subf %362, %380 : vector<16x1xf32>
      %382 = math.exp %381 : vector<16x1xf32>
      %383 = vector.broadcast %380 : vector<16x1xf32> to vector<16x8xf32>
      %384 = arith.subf %377, %383 : vector<16x8xf32>
      %385 = math.exp %384 : vector<16x8xf32>
      %cst_111 = arith.constant dense<0.000000e+00> : vector<16x8xf32>
      %386 = tpu.matmul %361, %365, %cst_111 {dimension_numbers = #tpu.dot_dimension_numbers<[1], [1], [0], [0], [0, 0, 1, 0], [], []>} : vector<16x8xf32>, vector<8x8xf32>, vector<16x8xf32> -> vector<16x8xf32>
      %387 = arith.mulf %386, %385 : vector<16x8xf32>
      %388 = arith.mulf %382, %363 : vector<16x1xf32>
      %cst_112 = arith.constant dense<0.000000e+00> : vector<16xf32>
      %389 = vector.multi_reduction <add>, %387, %cst_112 [1] : vector<16x8xf32> to vector<16xf32>
      %390 = vector.shape_cast %389 : vector<16xf32> to vector<16x1xf32>
      %391 = arith.addf %388, %390 : vector<16x1xf32>
      %392 = vector.broadcast %382 : vector<16x1xf32> to vector<16x8xf32>
      %393 = arith.mulf %392, %364 : vector<16x8xf32>
      %cst_113 = arith.constant dense<0.000000e+00> : vector<16x8xf32>
      %394 = tpu.matmul %387, %366, %cst_113 {dimension_numbers = #tpu.dot_dimension_numbers<[1], [0], [0], [1], [0, 0, 1, 1], [], []>} : vector<16x8xf32>, vector<8x8xf32>, vector<16x8xf32> -> vector<16x8xf32>
      %395 = arith.addf %393, %394 : vector<16x8xf32>
      %396 = vector.extract_strided_slice %22 {offsets = [8, 24], sizes = [8, 8], strides = [1, 1]} : vector<16x32xf32> to vector<8x8xf32>
      %397 = vector.extract_strided_slice %25 {offsets = [8, 24], sizes = [8, 8], strides = [1, 1]} : vector<16x32xf32> to vector<8x8xf32>
      %c8_i32_114 = arith.constant 8 : i32
      %398 = vector.broadcast %c8_i32_114 : i32 to vector<16x8xi32>
      %399 = arith.addi %398, %8 : vector<16x8xi32>
      %400 = arith.cmpi sle, %399, %7 : vector<16x8xi32>
      %cst_115 = arith.constant 0.000000e+00 : f32
      %cst_116 = arith.constant -1.000000e+30 : f32
      %401 = vector.broadcast %cst_115 : f32 to vector<16x8xf32>
      %402 = vector.broadcast %cst_116 : f32 to vector<16x8xf32>
      %403 = arith.select %400, %401, %402 : vector<16x8xi1>, vector<16x8xf32>
      %404 = vector.extract_strided_slice %50 {offsets = [3, 8], sizes = [1, 8], strides = [1, 1]} : vector<4x16xf32> to vector<1x8xf32>
      %405 = vector.broadcast %360 : vector<16x1xf32> to vector<16x8xf32>
      %406 = vector.broadcast %404 : vector<1x8xf32> to vector<16x8xf32>
      %407 = arith.addf %405, %406 : vector<16x8xf32>
      %408 = arith.addf %407, %403 : vector<16x8xf32>
      %cst_117 = arith.constant dense<0xFF800000> : vector<16xf32>
      %409 = vector.multi_reduction <maximumf>, %408, %cst_117 [1] : vector<16x8xf32> to vector<16xf32>
      %410 = vector.shape_cast %409 : vector<16xf32> to vector<16x1xf32>
      %411 = arith.maximumf %380, %410 : vector<16x1xf32>
      %412 = arith.subf %380, %411 : vector<16x1xf32>
      %413 = math.exp %412 : vector<16x1xf32>
      %414 = vector.broadcast %411 : vector<16x1xf32> to vector<16x8xf32>
      %415 = arith.subf %408, %414 : vector<16x8xf32>
      %416 = math.exp %415 : vector<16x8xf32>
      %cst_118 = arith.constant dense<0.000000e+00> : vector<16x8xf32>
      %417 = tpu.matmul %361, %396, %cst_118 {dimension_numbers = #tpu.dot_dimension_numbers<[1], [1], [0], [0], [0, 0, 1, 0], [], []>} : vector<16x8xf32>, vector<8x8xf32>, vector<16x8xf32> -> vector<16x8xf32>
      %418 = arith.mulf %417, %416 : vector<16x8xf32>
      %419 = arith.mulf %413, %391 : vector<16x1xf32>
      %cst_119 = arith.constant dense<0.000000e+00> : vector<16xf32>
      %420 = vector.multi_reduction <add>, %418, %cst_119 [1] : vector<16x8xf32> to vector<16xf32>
      %421 = vector.shape_cast %420 : vector<16xf32> to vector<16x1xf32>
      %422 = arith.addf %419, %421 : vector<16x1xf32>
      %423 = vector.broadcast %413 : vector<16x1xf32> to vector<16x8xf32>
      %424 = arith.mulf %423, %395 : vector<16x8xf32>
      %cst_120 = arith.constant dense<0.000000e+00> : vector<16x8xf32>
      %425 = tpu.matmul %418, %397, %cst_120 {dimension_numbers = #tpu.dot_dimension_numbers<[1], [0], [0], [1], [0, 0, 1, 1], [], []>} : vector<16x8xf32>, vector<8x8xf32>, vector<16x8xf32> -> vector<16x8xf32>
      %426 = arith.addf %424, %425 : vector<16x8xf32>
      %427 = math.absf %422 : vector<16x1xf32>
      %cst_121 = arith.constant 0.353553385 : f32
      %428 = vector.broadcast %cst_121 : f32 to vector<16x1xf32>
      %429 = arith.mulf %427, %428 : vector<16x1xf32>
      %cst_122 = arith.constant 0.000000e+00 : f32
      %430 = vector.broadcast %cst_122 : f32 to vector<16x1xf32>
      %431 = arith.subf %430, %411 : vector<16x1xf32>
      %432 = math.exp %431 : vector<16x1xf32>
      %433 = arith.maximumf %429, %432 : vector<16x1xf32>
      %cst_123 = arith.constant 9.99999997E-7 : f32
      %434 = vector.broadcast %cst_123 : f32 to vector<16x1xf32>
      %435 = arith.addf %433, %434 : vector<16x1xf32>
      %436 = tpu.reciprocal %435 {approx = true} : vector<16x1xf32> -> vector<16x1xf32>
      %cst_124 = arith.constant 0.353553385 : f32
      %437 = vector.broadcast %cst_124 : f32 to vector<16x1xf32>
      %438 = arith.mulf %437, %436 : vector<16x1xf32>
      %439 = vector.broadcast %438 : vector<16x1xf32> to vector<16x8xf32>
      %440 = arith.mulf %426, %439 : vector<16x8xf32>
      %cst_125 = arith.constant dense<0.000000e+00> : vector<16xf32>
      %441 = vector.multi_reduction <add>, %440, %cst_125 [1] : vector<16x8xf32> to vector<16xf32>
      %442 = vector.shape_cast %441 : vector<16xf32> to vector<16x1xf32>
      %cst_126 = arith.constant 8.000000e+00 : f32
      %443 = vector.broadcast %cst_126 : f32 to vector<16x1xf32>
      %444 = arith.divf %442, %443 : vector<16x1xf32>
      %445 = vector.broadcast %444 : vector<16x1xf32> to vector<16x8xf32>
      %446 = arith.subf %440, %445 : vector<16x8xf32>
      %447 = arith.mulf %446, %446 : vector<16x8xf32>
      %cst_127 = arith.constant dense<0.000000e+00> : vector<16xf32>
      %448 = vector.multi_reduction <add>, %447, %cst_127 [1] : vector<16x8xf32> to vector<16xf32>
      %449 = vector.shape_cast %448 : vector<16xf32> to vector<16x1xf32>
      %cst_128 = arith.constant 8.000000e+00 : f32
      %450 = vector.broadcast %cst_128 : f32 to vector<16x1xf32>
      %451 = arith.divf %449, %450 : vector<16x1xf32>
      %452 = vector.broadcast %444 : vector<16x1xf32> to vector<16x8xf32>
      %453 = arith.subf %440, %452 : vector<16x8xf32>
      %cst_129 = arith.constant 9.99999974E-6 : f32
      %454 = vector.broadcast %cst_129 : f32 to vector<16x1xf32>
      %455 = arith.addf %451, %454 : vector<16x1xf32>
      %456 = math.rsqrt %455 : vector<16x1xf32>
      %457 = vector.broadcast %456 : vector<16x1xf32> to vector<16x8xf32>
      %458 = arith.mulf %453, %457 : vector<16x8xf32>
      %459 = arith.index_cast %16 : i32 to index
      %c3 = arith.constant 3 : index
      %c0_130 = arith.constant 0 : index
      %c0_131 = arith.constant 0 : index
      %460 = vector.load %arg6[%459, %c3, %c0_130, %c0_131] : memref<8x4x16x8xf32, #tpu.memory_space<vmem>>, vector<1x1x16x8xf32>
      %461 = vector.shape_cast %460 : vector<1x1x16x8xf32> to vector<16x8xf32>
      %462 = vector.shape_cast %458 : vector<16x8xf32> to vector<1x1x16x8xf32>
      tpu.vector_store %arg6[%459, %c3, %c0_130, %c0_131], %462 {strides = array<i32>} : memref<8x4x16x8xf32, #tpu.memory_space<vmem>>, vector<1x1x16x8xf32>,
    }
    %c8_i32_3 = arith.constant 8 : i32
    return
  }
  func.func @transform_0(%arg0: i32) -> (i32, i32, i32) {
    %c0_i32 = arith.constant 0 : i32
    %c0_i32_0 = arith.constant 0 : i32
    %c0_i32_1 = arith.constant 0 : i32
    return %arg0, %c0_i32, %c0_i32_0 : i32, i32, i32
  }
  func.func @transform_1(%arg0: i32) -> (i32, i32, i32) {
    %c0_i32 = arith.constant 0 : i32
    %c0_i32_0 = arith.constant 0 : i32
    %c0_i32_1 = arith.constant 0 : i32
    return %arg0, %c0_i32, %c0_i32_0 : i32, i32, i32
  }
  func.func @transform_2(%arg0: i32) -> (i32, i32, i32) {
    %c0_i32 = arith.constant 0 : i32
    %c0_i32_0 = arith.constant 0 : i32
    %c0_i32_1 = arith.constant 0 : i32
    return %arg0, %c0_i32, %c0_i32_0 : i32, i32, i32
  }
  func.func @transform_3(%arg0: i32) -> (i32, i32) {
    %c0_i32 = arith.constant 0 : i32
    %c0_i32_0 = arith.constant 0 : i32
    %c0_i32_1 = arith.constant 0 : i32
    return %c0_i32, %c0_i32_0 : i32, i32
  }
  func.func @transform_4(%arg0: i32) -> (i32, i32) {
    %c0_i32 = arith.constant 0 : i32
    %c0_i32_0 = arith.constant 0 : i32
    %c0_i32_1 = arith.constant 0 : i32
    return %c0_i32, %c0_i32_0 : i32, i32
  }
  func.func @transform_5(%arg0: i32) -> (i32, i32, i32, i32) {
    %c0_i32 = arith.constant 0 : i32
    %c0_i32_0 = arith.constant 0 : i32
    %c0_i32_1 = arith.constant 0 : i32
    %c0_i32_2 = arith.constant 0 : i32
    return %arg0, %c0_i32, %c0_i32_0, %c0_i32_1 : i32, i32, i32, i32
  }
}

</mosaic_0001>

<bundles_post_ra>
// kernel: tpu_custom_call.1
= control target key start
LH: loop header
LB: loop body
LE: loop exit
PB: predicated region body
PF: predicated region fallthrough
CT: control target
= control target key end

     0   :  { %10 = vsyncpa [#allocation3], 0  ;;  %s4532_s0 = inlined_call_operand.hbm [shape: f32[16,16,32], index: 0, kind: input, shape index: {}]   ;;  %s4533_s1 = inlined_call_operand.hbm [shape: f32[16,16,32], index: 1, kind: input, shape index: {}]   ;;  %s4534_s2 = inlined_call_operand.hbm [shape: f32[16,16,32], index: 2, kind: input, shape index: {}]   ;;  %s4535_s3 = inlined_call_operand.vmem [shape: f32[96,8], index: 3, kind: input, shape index: {}]   ;;  %s4536_s4 = inlined_call_operand.vmem [shape: f32[1,8], index: 4, kind: input, shape index: {}]   ;;  %s4537_s5 = inlined_call_operand.vmem [shape: f32[16,4,16,8], index: 5, kind: output, shape index: {}]  }
   0x1   :  { %12 = vsyncpa [#allocation3 + $0x1], 0 }
   0x2   :  { %13 = vsyncpa [#allocation5], 0 }
   0x3   :  { %15 = vsyncpa [#allocation5 + $0x1], 0  ;;  %s3605_s18 = smov 0   ;;  %s3607_s19 = smov 0  }
   0x4   :  { %s3609_s20 = smov 0   ;;  %s3611_s21 = smov 0  }
   0x5 LB: > { %s3624_s22 = sadd.s32 4294967295, %s3550_s21   ;;  %s3627_s23 = sadd.s32 1, %s3550_s21   ;;  %s3550_s21 = sphi %s3611_s21, %s4575_s21   ;;  %s3546_s20 = sphi %s3609_s20, %s4574_s20   ;;  %s3542_s19 = sphi %s3607_s19, %s4573_s19   ;;  %s3538_s18 = sphi %s3605_s18, %s4572_s18  }
   0x6   : > { %s25_s24 = ssub.s32 %s3550_s21, %s3627_s23  ;;  %s28_s25 = sadd.s32 1, %s3546_s20 }
   0x7   : > { %p26_p0 = scmp.eq.s32.totalorder %s25_s24, 0  ;;  %p35_p1 = scmp.ne.s32.totalorder %s3546_s20, %s3542_s19 }
   0x8   : > { %p36_p2 = scmp.eq.s32.totalorder %s3550_s21, 0  ;;  %p41_p3 = scmp.ne.s32.totalorder %s3542_s19, %s3538_s18 }
   0x9   : > { %s3637_s26 = scalar_select %p26_p0, %s3546_s20, %s28_s25  }
   0xa   : > { %p37_p4 = por %p36_p2, %p35_p1  ;;  %p42_p5 = scmp.eq.s32.totalorder %s3624_s22, 0 }
   0xb   : > { %p3228_p6 = scmp.lt.s32.totalorder %s3550_s21, 2  ;;  %s191_s28 = sand.u32 1, %s3546_s20  }
   0xc   : > { %p3641_p7 = por %p42_p5, %p41_p3  ;;  %s3648_s29 = sshll.u32 %s191_s28, 7 }
   0xd   : > { %s3651_s30 = sshll.u32 %s3550_s21, 11  ;;  %p3653_p8 = pnand %p3228_p6, %p37_p4 }
   0xe   : > { %s4549_s27 = scalar_select %p3641_p7, 1, 0 }
   0xf   : > { %s213_s7 = sand.u32 1, %s3550_s21   ;;  %s3662_s10 = scalar_lea.hbm %s4533_s1, %s3651_s30 }
  0x10   : > { %s217_s11 = scalar_lea.vmem [#allocation4], %s3648_s29  ;;  %s3669_s13 = scalar_lea.sflag [#allocation5], %s213_s7 }
  0x11   : > { %s225_s12 = sshll.u32 %s217_s11, 4  ;;  %s3418_s14 = scalar_lea.hbm %s3662_s10, 2048  ;;  %s3666_s12 = int_to_ptr.vmem [resolvable:$true] %s225_s12 }
  0x12   : > { %p3419_p11 = scmp.ne.s32.totalorder %s3662_s10, %s3418_s14  ;;  %p3675_p12 = pneg %p3653_p8 }
  0x13   : > { %s3423_s18 = scalar_lea.hbm %s4533_s1, 4096  ;;  %p3424_p1 = scmp.lt.u32.totalorder %s3662_s10, %s4533_s1 }
  0x14   : > { %p3421_p13 = pnand %p3675_p12, %p3419_p11  ;;  %p3425_p2 = scmp.lt.u32.totalorder %s3423_s18, %s3418_s14 }
  0x15   : > { %p3427_p4 = scmp.lt.u32.totalorder %s3418_s14, %s3662_s10 }
  0x16   : > { %p3422_p0 = pneg %p3421_p13  ;;  %p3426_p3 = por %p3425_p2, %p3424_p1 }
  0x18   : > { %p3428_p5 = por %p3427_p4, %p3426_p3 }
  0x1a   : > { %p3429_p6 = pnand %p3428_p5, %p3422_p0 }
  0x1c   : > { %3432 = shalt.err (!%p3429_p6)
}
  0x1d   : > { %s3433_s7 = scalar_lea.vmem %s3666_s12, 2048  ;;  %s3556_s8 = smov [#allocation4]  }
  0x1e   : > { %p3434_p11 = scmp.ne.s32.totalorder %s3666_s12, %s3433_s7  ;;  %s3438_s9 = sshll.u32 %s3556_s8, 4  ;;  %s3439_s9 = int_to_ptr.vmem [resolvable:$false] %s3438_s9 }
  0x1f   : > { %s3440_s11 = scalar_lea.vmem %s3439_s9, 4096  ;;  %p3441_p10 = scmp.lt.s32.totalorder %s3666_s12, %s3439_s9 }
  0x20   : > { %p3436_p13 = pnand %p3434_p11, %p3675_p12  ;;  %p3442_p7 = scmp.lt.s32.totalorder %s3440_s11, %s3433_s7 }
  0x22   : > { %p3437_p9 = pneg %p3436_p13  ;;  %p3443_p1 = por %p3442_p7, %p3441_p10 }
  0x24   : > { %p3444_p2 = pnand %p3443_p1, %p3437_p9 }
  0x26   : > { %3447 = shalt.err (!%p3444_p2)
}
  0x27   : > { %s4539_s14 = smov 128   ;;  %s4541_s16 = smov 8  }
  0x28   : > { %3224 = dma.hbm_to_vmem [thread:$0]  (!%p3653_p8), %s3662_s10, 2048, %s3666_s12, %s3669_s13, %s4539_s14, %s4539_s14, %s4541_s16  }
  0x29   : > { %p4552_p7 = scmp.lt.s32.totalorder %s3550_s21, 3  ;;  %p4553_p9 = scmp.ge.s32.totalorder %s3550_s21, 1 }
  0x2a   : > { %s3714_s25 = scalar_lea.hbm %s4532_s0, %s3651_s30  ;;  %s195_s7 = scalar_lea.vmem [#allocation2], %s3648_s29 }
  0x2b   : > { %p3706_p10 = pnand %p4553_p9, %p4552_p7  ;;  %s203_s8 = sshll.u32 %s195_s7, 4  ;;  %s3717_s8 = int_to_ptr.vmem [resolvable:$true] %s203_s8 }
  0x2c   : > { %s3723_s21 = scalar_lea.hbm %s4534_s2, %s3651_s30  ;;  %s3727_s9 = scalar_lea.sflag [#allocation3], %s191_s28 }
  0x2d   : > { %s4554_s17 = scalar_select %p3706_p10, 1, 0 }
  0x2e   : > { %s3448_s11 = scalar_lea.hbm %s3714_s25, 2048  ;;  %s3453_s14 = scalar_lea.hbm %s4532_s0, 4096 }
  0x2f   : > { %p3449_p0 = scmp.ne.s32.totalorder %s3714_s25, %s3448_s11  ;;  %p3454_p5 = scmp.lt.u32.totalorder %s3714_s25, %s4532_s0 }
  0x30   : > { %p3455_p6 = scmp.lt.u32.totalorder %s3453_s14, %s3448_s11  ;;  %p3457_p13 = scmp.lt.u32.totalorder %s3448_s11, %s3714_s25 }
  0x31   : > { %p3451_p3 = pnand %p3449_p0, %p3675_p12 }
  0x32   : > { %p3456_p11 = por %p3455_p6, %p3454_p5 }
  0x33   : > { %p3452_p4 = pneg %p3451_p3 }
  0x34   : > { %p3458_p1 = por %p3457_p13, %p3456_p11 }
  0x36   : > { %p3459_p2 = pnand %p3458_p1, %p3452_p4 }
  0x38   : > { %3462 = shalt.err (!%p3459_p2)
}
  0x39   : > { %s3463_s28 = scalar_lea.vmem %s3717_s8, 2048  ;;  %s3559_s30 = smov [#allocation2]  }
  0x3a   : > { %p3464_p7 = scmp.ne.s32.totalorder %s3717_s8, %s3463_s28  ;;  %s3468_s10 = sshll.u32 %s3559_s30, 4  ;;  %s3469_s10 = int_to_ptr.vmem [resolvable:$false] %s3468_s10 }
  0x3b   : > { %s3470_s16 = scalar_lea.vmem %s3469_s10, 4096  ;;  %p3471_p3 = scmp.lt.s32.totalorder %s3717_s8, %s3469_s10 }
  0x3c   : > { %p3466_p9 = pnand %p3464_p7, %p3675_p12  ;;  %p3472_p10 = scmp.lt.s32.totalorder %s3470_s16, %s3463_s28 }
  0x3e   : > { %p3467_p0 = pneg %p3466_p9  ;;  %p3473_p5 = por %p3472_p10, %p3471_p3 }
  0x40   : > { %p3474_p6 = pnand %p3473_p5, %p3467_p0 }
  0x42   : > { %3477 = shalt.err (!%p3474_p6)
}
  0x43   : > { %s4555_s14 = smov 8   ;;  %s4556_s12 = smov 128  }
  0x44   : > { %3221 = dma.hbm_to_vmem [thread:$0]  (!%p3653_p8), %s3714_s25, 2048, %s3717_s8, %s3727_s9, %s4556_s12, %s4556_s12, %s4555_s14  }
  0x45   : > { %s239_s11 = scalar_lea.vmem [#allocation6], %s3648_s29  ;;  %s3478_s24 = scalar_lea.hbm %s3723_s21, 2048 }
  0x46   : > { %s247_s18 = sshll.u32 %s239_s11, 4  ;;  %p3479_p10 = scmp.ne.s32.totalorder %s3723_s21, %s3478_s24  ;;  %s3755_s18 = int_to_ptr.vmem [resolvable:$true] %s247_s18 }
  0x47   : > { %s3483_s30 = scalar_lea.hbm %s4534_s2, 4096  ;;  %p3484_p13 = scmp.lt.u32.totalorder %s3723_s21, %s4534_s2 }
  0x48   : > { %p3481_p4 = pnand %p3479_p10, %p3675_p12  ;;  %p3485_p1 = scmp.lt.u32.totalorder %s3483_s30, %s3478_s24 }
  0x49   : > { %p3487_p7 = scmp.lt.u32.totalorder %s3478_s24, %s3723_s21 }
  0x4a   : > { %p3482_p11 = pneg %p3481_p4  ;;  %p3486_p2 = por %p3485_p1, %p3484_p13 }
  0x4c   : > { %p3488_p9 = por %p3487_p7, %p3486_p2 }
  0x4e   : > { %p3489_p0 = pnand %p3488_p9, %p3482_p11 }
  0x50   : > { %3492 = shalt.err (!%p3489_p0)
}
  0x51   : > { %s3493_s29 = scalar_lea.vmem %s3755_s18, 2048  ;;  %s3560_s25 = smov [#allocation6]  }
  0x52   : > { %p3494_p3 = scmp.ne.s32.totalorder %s3755_s18, %s3493_s29  ;;  %s3498_s8 = sshll.u32 %s3560_s25, 4  ;;  %s3499_s8 = int_to_ptr.vmem [resolvable:$false] %s3498_s8 }
  0x53   : > { %s3500_s9 = scalar_lea.vmem %s3499_s8, 4096  ;;  %p3501_p10 = scmp.lt.s32.totalorder %s3755_s18, %s3499_s8 }
  0x54   : > { %p3496_p5 = pnand %p3494_p3, %p3675_p12  ;;  %p3502_p4 = scmp.lt.s32.totalorder %s3500_s9, %s3493_s29 }
  0x56   : > { %p3497_p6 = pneg %p3496_p5  ;;  %p3503_p13 = por %p3502_p4, %p3501_p10 }
  0x58   : > { %p3504_p1 = pnand %p3503_p13, %p3497_p6 }
  0x5a   : > { %3507 = shalt.err (!%p3504_p1)
}
  0x5b   : > { %3227 = dma.hbm_to_vmem [thread:$0]  (!%p3653_p8), %s3723_s21, 2048, %s3755_s18, %s3669_s13, %s4556_s12, %s4556_s12, %s4555_s14  }
  0x5c   : > { %p4557_p12 = scmp.ne.s32.totalorder %s4554_s17, 0 }
  0x5d   : > { %s261_s15 = sand.u32 (!%p4557_p12), 1, %s3542_s19   ;;  %p4558_p11 = scmp.ne.s32.totalorder (!%p4557_p12), %s4549_s27, 0 }
  0x5e   : > { %259 = sbr.rel (%p4557_p12) target bundleno = 1972 (0x7b4), region = 40  ;;  %s3785_s11 = sshll.u32 (!%p4557_p12), %s261_s15, 7 }
  0x5f   : > { %s262_s24 = scalar_lea.sflag (!%p4557_p12), [#allocation3], %s261_s15  ;;  %s265_s7 = scalar_lea.vmem (!%p4557_p12), [#allocation2], %s3785_s11 }
  0x65   : > { %3529 = dma.done.wait (%p4558_p11), %s262_s24, 2048  }
  0x66   : > { %3531 = vsyncadd (%p4558_p11), %s262_s24, 4294965248  ;;  %s270_s6 = sand.u32 1, %s3624_s22   ;;  %s274_s17 = scalar_lea.vmem [#allocation4], %s3785_s11 }
  0x67   : > { %s271_s13 = scalar_lea.sflag [#allocation5], %s270_s6 }
  0x68   : > { %3533 = dma.done.wait (%p4558_p11), %s271_s13, 4096  }
  0x69   : > { %3535 = vsyncadd (%p4558_p11), %s271_s13, 4294963200  ;;  %s2898_s21 = sshll.u32 %s3624_s22, 3  ;;  %v344_v0 = vlaneseq  ;;  %v3561_v4 = vmov 0.0   ;;  %v3827_v7 = vld [vmem:[%s4535_s3] sm:$0xff]  ;;  %v3832_v8 = vld [vmem:[%s4535_s3 + $0x8] sm:$0xff]  ;;  %s283_s15 = scalar_lea.vmem [#allocation6], %s3785_s11 }
  0x6a   : > { %p325_p8 = scmp.lt.s32.totalorder %s2898_s21, 15  ;;  %v3837_v9 = vld [vmem:[%s4535_s3 + $0x10] sm:$0xff]  ;;  %v3847_v11 = vld [vmem:[%s4535_s3 + $0x18] sm:$0xff]  ;;  %v3852_v12 = vld [vmem:[%s4535_s3 + $0x20] sm:$0xff]  ;;  %s3895_s24 = smov 0  }
  0x6b   : > { %v3799_v1 = vshrl.u32 %v344_v0, 7  ;;  %v3801_v2 = vand.u32 127, %v344_v0  ;;  %v3857_v13 = vld [vmem:[%s4535_s3 + $0x28] sm:$0xff]  ;;  %v3862_v14 = vld [vmem:[%s4535_s3 + $0x30] sm:$0xff]  ;;  %v3867_v15 = vld [vmem:[%s4535_s3 + $0x38] sm:$0xff] }
  0x6c   : > { %s4577_s21 = smov (!%p325_p8, %s2898_s21), 15  ;;  %v3872_v16 = vld [vmem:[%s4535_s3 + $0x40] sm:$0xff]  ;;  %v3877_v17 = vld [vmem:[%s4535_s3 + $0x48] sm:$0xff]  ;;  %v3882_v18 = vld [vmem:[%s4535_s3 + $0x50] sm:$0xff] }
  0x6d   : > { %4559 = vst [vmem:[#allocation9_spill] sm:$0xff] %v3799_v1  ;;  %4560 = vst [vmem:[#allocation10_spill] sm:$0xff] %v3801_v2  ;;  %v3804_v3 = vadd.s32 8, %v3799_v1  ;;  %vm349_vm0 = vcmp.le.s32.totalorder %v3801_v2, %v3799_v1  ;;  %vm355_vm1 = vcmp.eq.s32.totalorder %v3799_v1, %v3801_v2  ;;  %s2975_s27 = sshll.u32 %s4577_s21, 6  ;;  %v3887_v19 = vld [vmem:[%s4535_s3 + $0x58] sm:$0xff] }
  0x6e   : > { %v3813_v5 = vsel %vm349_vm0, 1.0, %v3561_v4  ;;  %v3815_v6 = vsel %vm355_vm1, 1.0, %v3561_v4  ;;  %s3820_s12 = scalar_lea.vmem %s4537_s5, %s2975_s27  ;;  %v3892_v20 = vld [vmem:[%s4536_s4] ss:$0 sm:$0xff] }
  0x6f   : > { %4561 = vst [vmem:[#allocation11_spill] sm:$0xff] %v3804_v3  ;;  %vm350_vm2 = vcmp.le.s32.totalorder %v3801_v2, %v3804_v3 }
  0x70   : > { %v3842_v10 = vsel %vm350_vm2, 1.0, %v3561_v4 }
  0x71 LB: >> { %v3176_v21 = vpack.c.bf16 %v3857_v13, %v3852_v12  ;;  %v3180_v22 = vpack.c.bf16 %v3867_v15, %v3862_v14  ;;  %s2904_s6 = sshll.u32 %s3554_s24, 4  ;;  %vm374_vm3 = vcmask 261120   ;;  %v3184_v24 = vpack.c.bf16 %v3832_v8, %v3827_v7  ;;  %s3563_s22 = smov 124   ;;  %s3554_s24 = sphi %s3895_s24, %s363_s24  }
  0x72   : >> { %s368_s13 = scalar_lea.vmem %s274_s17, %s2904_s6 [#allocation4]  ;;  %s365_s21 = scalar_lea.vmem %s265_s7, %s2904_s6 [#allocation2]  ;;  %v3188_v26 = vpack.c.bf16 %v3847_v11, %v3837_v9  ;;  %v3192_v28 = vpack.c.bf16 %v3877_v17, %v3872_v16  ;;  %v3196_v30 = vpack.c.bf16 %v3887_v19, %v3882_v18  ;;  %vm654_vm4 = vcmask 130048  }
  0x73   : >> { %3177 = vmatprep.subr.bf16.mxu0 %v3176_v21  ;;  %v3907_v23 = vld [vmem:[%s368_s13] sm:$0xff]  ;;  %v3915_v25 = vld [vmem:[%s368_s13 + $0x8] sm:$0xff]  ;;  %s371_s27 = scalar_lea.vmem %s283_s15, %s2904_s6 [#allocation6]  ;;  %3086 = vmatprep.mubr.msk.f32.mxu1 %vm654_vm4, %v3813_v5  ;;  %v3562_v55 = vmov 0   ;;  %v3564_v61 = vmov 0.0|0.0   ;;  %vm3565_vm5 = vmmov 0   ;;  %v3566_v62 = vmov 0.0  }
  0x74   : >> { %v4563_v2 = vld [vmem:[#allocation10_spill] sm:$0xff]  ;;  %v4564_v1 = vld [vmem:[#allocation9_spill] sm:$0xff]  ;;  %3179 = vmatpush3.bf16.msra.mxu0 %v3176_v21  ;;  %3057 = vmatprep.mubr.msk.f32.mxu0 %vm374_vm3, %v3907_v23  ;;  %vm738_vm6 = vcmask 31744   ;;  %vm838_vm8 = vcmask 64512   ;;  %s3569_s14 = smov 120   ;;  %s3570_s18 = smov 112  }
  0x75   : >> { %3181 = vmatprep.subr.bf16.mxu0 %v3180_v22  ;;  %v3919_v27 = vld [vmem:[%s365_s21] sm:$0xff]  ;;  %v3929_v29 = vld [vmem:[%s365_s21 + $0x8] sm:$0xff]  ;;  %3291 = vset.pattern.permute.xlu1 %v3562_v55  ;;  %vm3206_vm7 = vmpackc.low %vm738_vm6, %vm738_vm6  ;;  %s3571_s28 = smov 104   ;;  %s3572_s30 = smov 8   ;;  %vm1050_vm10 = vcmask 130112  }
  0x76   : >> { %v4562_v3 = vld [vmem:[#allocation11_spill] sm:$0xff]  ;;  %v3933_v31 = vld [vmem:[%s371_s27] sm:$0xff]  ;;  %v3939_v32 = vld [vmem:[%s371_s27 + $0x8] sm:$0xff]  ;;  %3290 = vset.pattern.permute.xlu0 %v3562_v55  ;;  %s2927_s10 = sshll.u32 %s3554_s24, 6  ;;  %s363_s24 = sadd.s32 1, %s3554_s24  }
  0x77   : >> { %s4494_s16 = scalar_lea.vmem %s3820_s12, %s2927_s10  ;;  %p360_p2 = scmp.ge.s32.totalorder %s363_s24, 8  }
  0x78   : >> { %3183 = vmatpush3.bf16.msra.mxu0 %v3180_v22 }
  0x79   : >> { %3185 = vmatprep.subr.bf16.mxu0 %v3184_v24 }
  0x7b   : >> { %3058 = vmatmul.mubr.msk.f32.vlgmr.msra.gmra.mrb[0].mxu0 %vm374_vm3, %v3915_v25 }
  0x7c   : >> { %3187 = vmatpush3.bf16.msra.mxu0 %v3184_v24  ;;  %3068 = vmatprep.mubr.msk.f32.mxu0 %vm374_vm3, %v3919_v27  ;;  %v3567_v24 = vmov 1  }
  0x7d   : >> { %3189 = vmatprep.subr.bf16.mxu0 %v3188_v26 }
  0x80   : >> { %3191 = vmatpush3.bf16.msra.mxu0 %v3188_v26  ;;  %v832_v26 = vsub.s32 0, %v4564_v1 }
  0x81   : >> { %3193 = vmatprep.subr.bf16.mxu0 %v3192_v28 }
  0x83   : >> { %3069 = vmatmul.mubr.msk.f32.vlgmr.msra.gmra.mrb[0].mxu0 %vm374_vm3, %v3929_v29 }
  0x84   : >> { %3195 = vmatpush3.bf16.msra.mxu0 %v3192_v28  ;;  %3079 = vmatprep.mubr.msk.f32.mxu0 %vm374_vm3, %v3933_v31 }
  0x85   : >> { %3197 = vmatprep.subr.bf16.mxu0 %v3196_v30 }
  0x88   : >> { %3199 = vmatpush3.bf16.msra.mxu0 %v3196_v30 }
  0x89   : >> { %3111 = vmatprep.subr.mxu0 %v3939_v32 }
  0x8b   : >> { %3080 = vmatmul.mubr.msk.f32.vlgmr.msra.gmra.mrb[0].mxu0 %vm374_vm3, %v3939_v32 }
  0x8c   : >> { %3112 = vmatpush3.msra.mxu0 %v3939_v32 }
 0x15e   : >> { %v3081_v33 = vpop.f32.mrb[0].mxu0 }
 0x15f   : >> { %v627_v34 = vadd.f32 %v3081_v33, %v3892_v20  ;;  %v609_v35 = vpop.f32.mrb[1].mxu0 }
 0x160   : >> { %v626_v36 = vadd.f32 %v3892_v20, %v609_v35 }
 0x161   : >> { %v631_v37 = vand.u32 2147483647, %v627_v34  ;;  %v629_v49 = vmin.f32 %v627_v34, 0.0 }
 0x162   : >> { %v630_v38 = vand.u32 2147483647, %v626_v36  ;;  %v628_v51 = vmin.f32 %v626_v36, 0.0 }
 0x163   : >> { %v633_v39 = vsub.f32 0.0, %v631_v37 }
 0x164   : >> { %v632_v40 = vsub.f32 0.0, %v630_v38 }
 0x165   : >> { %v636_v41 = vmul.f32 1.442695, %v633_v39 }
 0x166   : >> { %v634_v42 = vmul.f32 1.442695, %v632_v40 }
 0x167   : >> { %3298 = vpow2.f32 %v636_v41 }
 0x168   : >> { %3300 = vpow2.f32 %v634_v42 }
 0x171   : >> { %v3299_v43 = vpop.eup %3298 }
 0x172   : >> { %v3301_v44 = vpop.eup %3300  ;;  %v639_v45 = vadd.f32 1.0, %v3299_v43 }
 0x173   : >> { %v638_v46 = vadd.f32 1.0, %v3301_v44 }
 0x174   : >> { %3302 = vlog2.f32 %v639_v45 }
 0x175   : >> { %3304 = vlog2.f32 %v638_v46 }
 0x17e   : >> { %v3303_v47 = vpop.eup %3302 }
 0x17f   : >> { %v3305_v48 = vpop.eup %3304  ;;  %v643_v50 = vmul.f32 0.6931472, %v3303_v47  ;;  %v1035_v47 = vadd.s32 8, %v4563_v2 }
 0x180   : >> { %v641_v52 = vmul.f32 0.6931472, %v3305_v48 }
 0x181   : >> { %v645_v53 = vsub.f32 %v629_v49, %v643_v50  ;;  %vm1037_vm9 = vcmp.le.s32.totalorder %v1035_v47, %v4562_v3  ;;  %v3574_v49 = vmov 3  }
 0x182   : >> { %v644_v54 = vsub.f32 %v628_v51, %v641_v52 }
 0x184   : >> { %v3285_v56 = vpack.i.bf16 %v645_v53, %v644_v54 }
 0x186   : >> { %3286 = vrot.lane.b32.xlu0 %v3285_v56, %s3563_s22 }
 0x1f8   : >> { %v3287_v57 = vpop.permute.xlu0 %3286 }
 0x1f9   : >> { %v3289_v58 = vunpack.i.h.bf16 %v3287_v57  ;;  %v3288_v59 = vunpack.i.l.bf16 %v3287_v57 }
 0x1fb   : >> { %v3200_v60 = vpack.c.bf16 %v3289_v58, %v3288_v59 }
 0x1fd   : >> { %3201 = vmatprep.subr.bf16.mxu1 %v3200_v60 }
 0x1fe   : >> { %3203 = vmatpush3.bf16.msra.mxu1 %v3200_v60 }
 0x1ff   : >> { %3204 = vmatprep.subr.bf16.mxu1 %v3564_v61 }
 0x201   : >> { %3087 = vmatmul.mubr.msk.f32.vlgmr.msra.gmra.mrb[0].mxu1 %vm654_vm4, %v3842_v10 }
 0x202   : >> { %3093 = vmatprep.mubr.msk.f32.mxu1 %vm3565_vm5, %v3566_v62 }
 0x2d4   : >> { %v3951_v63 = vpop.f32.mrb[0].mxu1 }
 0x2d5   : >> { %v737_v0 = vsub.f32 %v627_v34, %v3951_v63  ;;  %827 = vperm.xlu1 %3291, %v3951_v63   ;;  %v3955_v4 = vpop.f32.mrb[1].mxu1 }
 0x2d6   : >> { %v736_v21 = vsub.f32 %v626_v36, %v3955_v4  ;;  %822 = vperm.xlu0 %3290, %v3955_v4   ;;  %v3568_v36 = vmov -1e+30  }
 0x2d7   : >> { %v3979_v37 = vsel %vm350_vm2, 0.0, %v3568_v36  ;;  %v3984_v38 = vsel %vm349_vm0, 0.0, %v3568_v36  ;;  %v1039_v48 = vsel %vm1037_vm9, 0.0, %v3568_v36 }
 0x2d8   : >> { %v3205_v22 = vpack.c.bf16 %v737_v0, %v736_v21 }
 0x2d9   : >> { %3293 = vset.pattern.permute.xlu1 %v3567_v24 }
 0x2da   : >> { %3207 = vmatpush3.bf16.xpose.msk.msra.mxu1 %vm3206_vm7, %v3205_v22  ;;  %3292 = vset.pattern.permute.xlu0 %v3567_v24 }
 0x2db   : >> { %3096 = vmatprep.subr.msk.mxu1 %vm838_vm8, %v3907_v23 }
 0x2e1   : >> { %3094 = vmatmul.mubr.msk.f32.vlgmr.msra.gmra.mrb[2].mxu1 %vm738_vm6, %v3815_v6 }
 0x2e2   : >> { %3097 = vmatpush3.xpose.msk.msra.mxu1 %vm838_vm8, %v3907_v23  ;;  %3098 = vmatprep.mubr.msk.f32.mxu1 %vm838_vm8, %v3919_v27 }
 0x2e3   : >> { %3101 = vmatprep.subr.mxu1 %v3933_v31 }
 0x2e5   : >> { %3099 = vmatmul.mubr.msk.f32.vlgmr.msra.gmra.mrb[4].mxu1 %vm838_vm8, %v3929_v29 }
 0x2e6   : >> { %3102 = vmatpush3.msra.mxu1 %v3933_v31 }
 0x2e7   : >> { %3106 = vmatprep.subr.msk.mxu1 %vm838_vm8, %v3915_v25 }
 0x354   : >> { %v828_v34 = vpop.permute.xlu1 %827 }
 0x355   : >> { %v823_v35 = vpop.permute.xlu0 %822 }
 0x3b4   : >> { %v3973_v28 = vpop.f32.mrb[2].mxu1 }
 0x3b5   : >> { %v833_v30 = vrot.slane %v3973_v28, %v832_v26  ;;  %v3095_v33 = vpop.f32.mrb[3].mxu1 }
 0x3b7   : >> { %v3986_v39 = vadd.f32 %v833_v30, %v828_v34  ;;  %v3988_v40 = vadd.f32 %v833_v30, %v823_v35 }
 0x3b8   : >> { %v3100_v45 = vpop.f32.mrb[4].mxu1 }
 0x3b9   : >> { %v837_v41 = vadd.f32 %v3986_v39, %v3979_v37  ;;  %v836_v42 = vadd.f32 %v3988_v40, %v3984_v38  ;;  %v931_v46 = vpop.f32.mrb[5].mxu1 }
 0x3bb   : >> { %v842_v43 = vsel %vm838_vm8, %v837_v41, -inf  ;;  %v839_v44 = vsel %vm838_vm8, %v836_v42, -inf }
 0x3bc   : >> { %843 = vmax.xlane.f32.xlu0 %v842_v43  ;;  %840 = vmax.xlane.f32.xlu1 %v839_v44  ;;  %v1794_v43 = vsub.s32 2, %v4564_v1 }
 0x3cd   : >> { %1344 = vrot.lane.b32.xlu1 %v3907_v23, %s3569_s14 }
 0x3d1   : >> { %1342 = vrot.lane.b32.xlu1 %v3929_v29, %s3569_s14 }
 0x3d2   : >> { %1340 = vrot.lane.b32.xlu0 %v3919_v27, %s3569_s14 }
 0x3d5   : >> { %1547 = vrot.lane.b32.xlu1 %v3915_v25, %s3569_s14 }
 0x3d6   : >> { %1824 = vrot.lane.b32.xlu0 %v3907_v23, %s3570_s18 }
 0x3d9   : >> { %1820 = vrot.lane.b32.xlu1 %v3919_v27, %s3570_s18 }
 0x3da   : >> { %1822 = vrot.lane.b32.xlu0 %v3929_v29, %s3570_s18 }
 0x3dd   : >> { %2027 = vrot.lane.b32.xlu1 %v3915_v25, %s3570_s18 }
 0x3de   : >> { %2304 = vrot.lane.b32.xlu0 %v3907_v23, %s3571_s28  ;;  %v3573_v23 = vmov 2  }
 0x3e1   : >> { %2300 = vrot.lane.b32.xlu1 %v3919_v27, %s3571_s28 }
 0x3e2   : >> { %2302 = vrot.lane.b32.xlu0 %v3929_v29, %s3571_s28 }
 0x3e5   : >> { %2507 = vrot.lane.b32.xlu1 %v3915_v25, %s3571_s28 }
 0x3e6   : >> { %1305 = vperm.xlu0 %3292, %v3955_v4  }
 0x3e9   : >> { %1309 = vperm.xlu1 %3293, %v3951_v63  }
 0x3ea   : >> { %1044 = vrot.lane.b32.xlu0 %v1039_v48, %s3572_s30  ;;  %v1795_v48 = vrot.slane %v3973_v28, %v1794_v43 }
 0x3eb   : >> { %3295 = vset.pattern.permute.xlu0 %v3573_v23 }
 0x3ed   : >> { %1042 = vrot.lane.b32.xlu1 %v3568_v36, %s3572_s30 }
 0x3ee   : >> { %1789 = vperm.xlu0 %3295, %v3951_v63   ;;  %3294 = vset.pattern.permute.xlu1 %v3573_v23  ;;  %v2274_v23 = vsub.s32 3, %v4564_v1 }
 0x3f1   : >> { %1785 = vperm.xlu1 %3294, %v3955_v4  }
 0x3f2   : >> { %3297 = vset.pattern.permute.xlu0 %v3574_v49 }
 0x3f5   : >> { %3296 = vset.pattern.permute.xlu1 %v3574_v49 }
 0x3f6   : >> { %2265 = vperm.xlu1 %3296, %v3955_v4  }
 0x3fa   : >> { %2269 = vperm.xlu1 %3296, %v3951_v63  }
 0x449   : >> { %v844_v50 = vpop.xlane.xlu0 %843  ;;  %v841_v51 = vpop.xlane.xlu1 %840 }
 0x44a   : >> { %v4028_v52 = vmax.f32 %v844_v50, -1e+30  ;;  %v4030_v53 = vmax.f32 %v841_v51, -1e+30 }
 0x44c   : >> { %v854_v54 = vsub.f32 %v837_v41, %v4028_v52  ;;  %v853_v55 = vsub.f32 %v836_v42, %v4030_v53 }
 0x44d   : >> { %v1341_v56 = vpop.permute.xlu0 %1340  ;;  %v1345_v57 = vpop.permute.xlu1 %1344 }
 0x44e   : >> { %v857_v58 = vmul.f32 1.442695, %v854_v54  ;;  %v855_v59 = vmul.f32 1.442695, %v853_v55 }
 0x450   : >> { %3306 = vpow2.f32 %v857_v58 }
 0x451   : >> { %3308 = vpow2.f32 %v855_v59  ;;  %v1825_v60 = vpop.permute.xlu0 %1824  ;;  %v1343_v61 = vpop.permute.xlu1 %1342 }
 0x455   : >> { %v1823_v62 = vpop.permute.xlu0 %1822  ;;  %v1548_v63 = vpop.permute.xlu1 %1547 }
 0x459   : >> { %v1821_v0 = vpop.permute.xlu1 %1820  ;;  %v2305_v22 = vpop.permute.xlu0 %2304 }
 0x45a   : >> { %v3307_v4 = vpop.eup %3306 }
 0x45b   : >> { %v3309_v21 = vpop.eup %3308  ;;  %v4034_v24 = vmul.f32 %v3307_v4, %v3100_v45 }
 0x45c   : >> { %v4036_v26 = vmul.f32 %v3309_v21, %v931_v46 }
 0x45d   : >> { %v2028_v30 = vpop.permute.xlu1 %2027  ;;  %v4046_v33 = vpop.permute.xlu0 %2302 }
 0x45e   : >> { %3103 = vmatprep.mubr.msk.f32.mxu1 %vm838_vm8, %v4036_v26 }
 0x45f   : >> { %3104 = vmatmul.mubr.msk.f32.vlgmr.msra.gmra.mrb[6].mxu1 %vm838_vm8, %v4034_v24 }
 0x460   : >> { %3107 = vmatpush3.xpose.msk.msra.mxu1 %vm838_vm8, %v3915_v25  ;;  %3108 = vmatprep.mubr.msk.f32.mxu1 %vm838_vm8, %v3919_v27  ;;  %v1314_v25 = vsub.s32 1, %v4564_v1 }
 0x461   : >> { %3116 = vmatprep.subr.msk.mxu1 %vm838_vm8, %v1345_v57  ;;  %v2301_v34 = vpop.permute.xlu1 %2300 }
 0x462   : >> { %v1315_v41 = vrot.slane %v3973_v28, %v1314_v25 }
 0x463   : >> { %3109 = vmatmul.mubr.msk.f32.vlgmr.msra.gmra.mrb[8].mxu1 %vm838_vm8, %v3929_v29 }
 0x464   : >> { %3117 = vmatpush3.xpose.msk.msra.mxu1 %vm838_vm8, %v1345_v57  ;;  %3118 = vmatprep.mubr.msk.f32.mxu1 %vm838_vm8, %v1341_v56  ;;  %v2275_v57 = vrot.slane %v3973_v28, %v2274_v23 }
 0x465   : >> { %3126 = vmatprep.subr.msk.mxu1 %vm838_vm8, %v1548_v63  ;;  %v1306_v35 = vpop.permute.xlu0 %1305  ;;  %v2508_v36 = vpop.permute.xlu1 %2507 }
 0x466   : >> { %v1316_v44 = vadd.f32 %v1315_v41, %v1306_v35 }
 0x467   : >> { %3119 = vmatmul.mubr.msk.f32.vlgmr.msra.gmra.mrb[10].mxu1 %vm838_vm8, %v1343_v61 }
 0x468   : >> { %3127 = vmatpush3.xpose.msk.msra.mxu1 %vm838_vm8, %v1548_v63  ;;  %3128 = vmatprep.mubr.msk.f32.mxu1 %vm838_vm8, %v1341_v56  ;;  %v4088_v51 = vadd.f32 %v1316_v44, %v3984_v38 }
 0x469   : >> { %3136 = vmatprep.subr.msk.mxu1 %vm838_vm8, %v1825_v60  ;;  %v4059_v27 = vpop.permute.xlu0 %1044  ;;  %v1310_v29 = vpop.permute.xlu1 %1309 }
 0x46a   : >> { %v4064_v42 = vadd.f32 %v4059_v27, %v3986_v39  ;;  %v1317_v49 = vadd.f32 %v1315_v41, %v1310_v29  ;;  %v1320_v56 = vsel %vm838_vm8, %v4088_v51, -inf }
 0x46b   : >> { %3129 = vmatmul.mubr.msk.f32.vlgmr.msra.gmra.mrb[12].mxu1 %vm838_vm8, %v1343_v61 }
 0x46c   : >> { %3137 = vmatpush3.xpose.msk.msra.mxu1 %vm838_vm8, %v1825_v60  ;;  %3138 = vmatprep.mubr.msk.f32.mxu1 %vm838_vm8, %v1821_v0  ;;  %v1054_v45 = vsel %vm1050_vm10, %v4064_v42, -inf  ;;  %v4101_v59 = vadd.f32 %v1317_v49, %v3979_v37  ;;  %v4115_v21 = vadd.f32 %v1317_v49, %v4059_v27 }
 0x46d   : >> { %3146 = vmatprep.subr.msk.mxu1 %vm838_vm8, %v2028_v30  ;;  %1055 = vmax.xlane.f32.xlu1 %v1054_v45  ;;  %v1043_v46 = vpop.permute.xlu1 %1042  ;;  %v1790_v60 = vpop.permute.xlu0 %1789 }
 0x46e   : >> { %v4074_v47 = vadd.f32 %v1043_v46, %v3988_v40  ;;  %v4076_v39 = vadd.f32 %v1316_v44, %v1043_v46  ;;  %v1797_v28 = vadd.f32 %v1795_v48, %v1790_v60  ;;  %v1323_v4 = vsel %vm838_vm8, %v4101_v59, -inf }
 0x46f   : >> { %3139 = vmatmul.mubr.msk.f32.vlgmr.msra.gmra.mrb[14].mxu1 %vm838_vm8, %v1823_v62 }
 0x470   : >> { %3147 = vmatpush3.xpose.msk.msra.mxu1 %vm838_vm8, %v2028_v30  ;;  %3148 = vmatprep.mubr.msk.f32.mxu1 %vm838_vm8, %v1821_v0  ;;  %v1051_v50 = vsel %vm1050_vm10, %v4074_v47, -inf  ;;  %v1527_v40 = vsel %vm1050_vm10, %v4076_v39, -inf  ;;  %v4127_v35 = vadd.f32 %v1797_v28, %v3979_v37 }
 0x471   : >> { %3156 = vmatprep.subr.msk.mxu1 %vm838_vm8, %v2305_v22  ;;  %1052 = vmax.xlane.f32.xlu0 %v1051_v50  ;;  %v1786_v54 = vpop.permute.xlu1 %1785 }
 0x472   : >> { %1528 = vmax.xlane.f32.xlu1 %v1527_v40  ;;  %v1796_v55 = vadd.f32 %v1795_v48, %v1786_v54  ;;  %v1803_v41 = vsel %vm838_vm8, %v4127_v35, -inf }
 0x473   : >> { %3149 = vmatmul.mubr.msk.f32.vlgmr.msra.gmra.mrb[16].mxu1 %vm838_vm8, %v1823_v62 }
 0x474   : >> { %3157 = vmatpush3.xpose.msk.msra.mxu1 %vm838_vm8, %v2305_v22  ;;  %3158 = vmatprep.mubr.msk.f32.mxu1 %vm838_vm8, %v2301_v34  ;;  %v4098_v58 = vadd.f32 %v1796_v55, %v3984_v38  ;;  %v4106_v0 = vadd.f32 %v1796_v55, %v1043_v46 }
 0x475   : >> { %3166 = vmatprep.subr.msk.mxu1 %vm838_vm8, %v2508_v36  ;;  %1321 = vmax.xlane.f32.xlu0 %v1320_v56  ;;  %v2266_v61 = vpop.permute.xlu1 %2265 }
 0x476   : >> { %v2276_v62 = vadd.f32 %v2275_v57, %v2266_v61  ;;  %v1800_v63 = vsel %vm838_vm8, %v4098_v58, -inf  ;;  %v2007_v22 = vsel %vm1050_vm10, %v4106_v0, -inf }
 0x477   : >> { %3159 = vmatmul.mubr.msk.f32.vlgmr.msra.gmra.mrb[18].mxu1 %vm838_vm8, %v4046_v33  ;;  %1801 = vmax.xlane.f32.xlu1 %v1800_v63 }
 0x478   : >> { %3167 = vmatpush3.xpose.msk.msra.mxu1 %vm838_vm8, %v2508_v36  ;;  %3168 = vmatprep.mubr.msk.f32.mxu1 %vm838_vm8, %v2301_v34  ;;  %v4120_v30 = vadd.f32 %v2276_v62, %v3984_v38  ;;  %v1530_v34 = vsel %vm1050_vm10, %v4115_v21, -inf  ;;  %v4131_v29 = vadd.f32 %v2276_v62, %v1043_v46 }
 0x479   : >> { %1324 = vmax.xlane.f32.xlu0 %v1323_v4  ;;  %v2270_v36 = vpop.permute.xlu1 %2269 }
 0x47a   : >> { %v2280_v25 = vsel %vm838_vm8, %v4120_v30, -inf  ;;  %v2277_v38 = vadd.f32 %v2275_v57, %v2270_v36  ;;  %v2487_v43 = vsel %vm1050_vm10, %v4131_v29, -inf }
 0x47b   : >> { %3169 = vmatmul.mubr.msk.f32.vlgmr.msra.gmra.mrb[20].mxu1 %vm838_vm8, %v4046_v33  ;;  %2008 = vmax.xlane.f32.xlu1 %v2007_v22  ;;  %v4136_v33 = vadd.f32 %v1797_v28, %v4059_v27 }
 0x47c   : >> { %v4143_v45 = vadd.f32 %v2277_v38, %v3979_v37  ;;  %v4148_v48 = vadd.f32 %v2277_v38, %v4059_v27 }
 0x47d   : >> { %1531 = vmax.xlane.f32.xlu0 %v1530_v34  ;;  %v2010_v44 = vsel %vm1050_vm10, %v4136_v33, -inf }
 0x47e   : >> { %v2283_v46 = vsel %vm838_vm8, %v4143_v45, -inf  ;;  %v2490_v23 = vsel %vm1050_vm10, %v4148_v48, -inf }
 0x47f   : >> { %2281 = vmax.xlane.f32.xlu1 %v2280_v25 }
 0x481   : >> { %1804 = vmax.xlane.f32.xlu0 %v1803_v41 }
 0x483   : >> { %2488 = vmax.xlane.f32.xlu1 %v2487_v43 }
 0x485   : >> { %2011 = vmax.xlane.f32.xlu0 %v2010_v44 }
 0x489   : >> { %2284 = vmax.xlane.f32.xlu0 %v2283_v46 }
 0x48d   : >> { %2491 = vmax.xlane.f32.xlu0 %v2490_v23 }
 0x4a3   : >> { %1439 = vrot.lane.b32.xlu0 %v3933_v31, %s3569_s14 }
 0x4a7   : >> { %1648 = vrot.lane.b32.xlu0 %v3939_v32, %s3569_s14 }
 0x4ab   : >> { %1919 = vrot.lane.b32.xlu0 %v3933_v31, %s3570_s18 }
 0x4af   : >> { %2128 = vrot.lane.b32.xlu0 %v3939_v32, %s3570_s18 }
 0x4fa   : >> { %v1056_v37 = vpop.xlane.xlu1 %1055 }
 0x4fb   : >> { %v4161_v27 = vmax.f32 %v4028_v52, %v1056_v37 }
 0x4fd   : >> { %v1066_v49 = vsub.f32 %v4064_v42, %v4161_v27 }
 0x4fe   : >> { %v1053_v50 = vpop.xlane.xlu0 %1052 }
 0x4ff   : >> { %v1069_v40 = vmul.f32 1.442695, %v1066_v49  ;;  %v4166_v54 = vmax.f32 %v4030_v53, %v1053_v50  ;;  %v1529_v55 = vpop.xlane.xlu1 %1528 }
 0x501   : >> { %v1065_v56 = vsub.f32 %v4074_v47, %v4166_v54  ;;  %3310 = vpow2.f32 %v1069_v40 }
 0x502   : >> { %v1322_v57 = vpop.xlane.xlu0 %1321 }
 0x503   : >> { %v1067_v60 = vmul.f32 1.442695, %v1065_v56  ;;  %v4170_v61 = vmax.f32 %v1322_v57, -1e+30 }
 0x504   : >> { %v1802_v62 = vpop.xlane.xlu1 %1801 }
 0x505   : >> { %3312 = vpow2.f32 %v1067_v60  ;;  %v4173_v63 = vmax.f32 %v4170_v61, %v1529_v55  ;;  %v4175_v28 = vmax.f32 %v1802_v62, -1e+30 }
 0x506   : >> { %v1325_v42 = vpop.xlane.xlu0 %1324 }
 0x507   : >> { %v1541_v22 = vsub.f32 %v4076_v39, %v4173_v63  ;;  %v4184_v25 = vmax.f32 %v1325_v42, -1e+30 }
 0x508   : >> { %v2009_v47 = vpop.xlane.xlu1 %2008 }
 0x509   : >> { %v4182_v34 = vmax.f32 %v4175_v28, %v2009_v47  ;;  %v1543_v36 = vmul.f32 1.442695, %v1541_v22 }
 0x50a   : >> { %v1532_v38 = vpop.xlane.xlu0 %1531 }
 0x50b   : >> { %v3311_v43 = vpop.eup %3310  ;;  %v4189_v44 = vmax.f32 %v4184_v25, %v1532_v38  ;;  %3314 = vpow2.f32 %v1543_v36  ;;  %v2021_v50 = vsub.f32 %v4106_v0, %v4182_v34 }
 0x50c   : >> { %v2282_v46 = vpop.xlane.xlu1 %2281  ;;  %1152 = vrot.lane.b32.xlu0 %v3311_v43, %s3569_s14 }
 0x50d   : >> { %v1542_v23 = vsub.f32 %v4115_v21, %v4189_v44  ;;  %v4198_v55 = vmax.f32 %v2282_v46, -1e+30  ;;  %v2023_v21 = vmul.f32 1.442695, %v2021_v50 }
 0x50e   : >> { %v1805_v37 = vpop.xlane.xlu0 %1804 }
 0x50f   : >> { %v3313_v49 = vpop.eup %3312  ;;  %v1545_v40 = vmul.f32 1.442695, %v1542_v23  ;;  %v4200_v57 = vmax.f32 %v1805_v37, -1e+30 }
 0x510   : >> { %v2489_v56 = vpop.xlane.xlu1 %2488  ;;  %1150 = vrot.lane.b32.xlu1 %v3313_v49, %s3569_s14 }
 0x511   : >> { %v4204_v60 = vmax.f32 %v4198_v55, %v2489_v56  ;;  %3316 = vpow2.f32 %v1545_v40 }
 0x512   : >> { %v2012_v62 = vpop.xlane.xlu0 %2011  ;;  %3318 = vpow2.f32 %v2023_v21 }
 0x513   : >> { %v4207_v42 = vmax.f32 %v4200_v57, %v2012_v62  ;;  %v2501_v43 = vsub.f32 %v4131_v29, %v4204_v60  ;;  %v847_v29 = vsub.f32 -1e+30, %v4030_v53 }
 0x514   : >> { %2399 = vrot.lane.b32.xlu1 %v3933_v31, %s3571_s28 }
 0x515   : >> { %v2022_v47 = vsub.f32 %v4136_v33, %v4207_v42  ;;  %v3315_v38 = vpop.eup %3314  ;;  %v2503_v50 = vmul.f32 1.442695, %v2501_v43  ;;  %v848_v33 = vsub.f32 -1e+30, %v4028_v52  ;;  %v1060_v43 = vsub.f32 %v4028_v52, %v4161_v27 }
 0x516   : >> { %v2285_v36 = vpop.xlane.xlu0 %2284  ;;  %1628 = vrot.lane.b32.xlu0 %v3315_v38, %s3569_s14 }
 0x517   : >> { %v2025_v46 = vmul.f32 1.442695, %v2022_v47  ;;  %v4220_v23 = vmax.f32 %v2285_v36, -1e+30  ;;  %v851_v47 = vmul.f32 1.442695, %v848_v33  ;;  %v1334_v33 = vsub.f32 %v4088_v51, %v4170_v61 }
 0x518   : >> { %v849_v36 = vmul.f32 1.442695, %v847_v29  ;;  %v1814_v51 = vsub.f32 %v4098_v58, %v4175_v28 }
 0x519   : >> { %3320 = vpow2.f32 %v2025_v46 }
 0x51a   : >> { %v2492_v37 = vpop.xlane.xlu0 %2491  ;;  %3322 = vpow2.f32 %v2503_v50  ;;  %v1335_v50 = vsub.f32 %v4101_v59, %v4184_v25 }
 0x51b   : >> { %v4223_v49 = vmax.f32 %v4220_v23, %v2492_v37  ;;  %v3317_v56 = vpop.eup %3316  ;;  %v1063_v37 = vmul.f32 1.442695, %v1060_v43 }
 0x51c   : >> { %1630 = vrot.lane.b32.xlu0 %v3317_v56, %s3569_s14  ;;  %v3319_v38 = vpop.eup %3318  ;;  %v1338_v29 = vmul.f32 1.442695, %v1335_v50  ;;  %v1336_v56 = vmul.f32 1.442695, %v1334_v33  ;;  %v1816_v33 = vmul.f32 1.442695, %v1814_v51 }
 0x51d   : >> { %v2502_v40 = vsub.f32 %v4148_v48, %v4223_v49  ;;  %v1059_v48 = vsub.f32 %v4030_v53, %v4166_v54 }
 0x51e   : >> { %v4231_v62 = vpop.permute.xlu0 %1439 }
 0x51f   : >> { %v2505_v21 = vmul.f32 1.442695, %v2502_v40  ;;  %3121 = vmatprep.subr.mxu0 %v4231_v62  ;;  %v1061_v40 = vmul.f32 1.442695, %v1059_v48 }
 0x520   : >> { %2108 = vrot.lane.b32.xlu0 %v3319_v38, %s3569_s14 }
 0x521   : >> { %3324 = vpow2.f32 %v2505_v21 }
 0x522   : >> { %3326 = vpow2.f32 %v851_v47 }
 0x523   : >> { %3328 = vpow2.f32 %v849_v36  ;;  %v3321_v46 = vpop.eup %3320  ;;  %v1815_v36 = vsub.f32 %v4127_v35, %v4200_v57 }
 0x524   : >> { %2110 = vrot.lane.b32.xlu0 %v3321_v46, %s3569_s14  ;;  %v3323_v52 = vpop.eup %3322  ;;  %3330 = vpow2.f32 %v1063_v37 }
 0x525   : >> { %3332 = vpow2.f32 %v1061_v40  ;;  %v1818_v40 = vmul.f32 1.442695, %v1815_v36 }
 0x526   : >> { %3334 = vpow2.f32 %v1338_v29 }
 0x527   : >> { %3336 = vpow2.f32 %v1336_v56  ;;  %v944_v56 = vsel %vm838_vm8, %v4036_v26, 0.0 }
 0x528   : >> { %2588 = vrot.lane.b32.xlu0 %v3323_v52, %s3569_s14  ;;  %3338 = vpow2.f32 %v1818_v40 }
 0x529   : >> { %3340 = vpow2.f32 %v1816_v33 }
 0x52b   : >> { %v3325_v53 = vpop.eup %3324 }
 0x52c   : >> { %v3327_v21 = vpop.eup %3326  ;;  %2590 = vrot.lane.b32.xlu0 %v3325_v53, %s3569_s14 }
 0x52d   : >> { %v3329_v47 = vpop.eup %3328  ;;  %v4251_v59 = vmul.f32 0.0, %v3327_v21  ;;  %v2294_v21 = vsub.f32 %v4120_v30, %v4198_v55 }
 0x52e   : >> { %v4253_v43 = vmul.f32 0.0, %v3329_v47  ;;  %v4258_v37 = vpop.eup %3330 }
 0x52f   : >> { %v4261_v50 = vpop.eup %3332  ;;  %v2296_v31 = vmul.f32 1.442695, %v2294_v21 }
 0x530   : >> { %2608 = vrot.lane.b32.xlu0 %v3939_v32, %s3571_s28  ;;  %v2295_v32 = vsub.f32 %v4143_v45, %v4220_v23  ;;  %v3335_v47 = vpop.eup %3334 }
 0x531   : >> { %v3337_v51 = vpop.eup %3336 }
 0x532   : >> { %v3105_v38 = vpop.f32.mrb[6].mxu1  ;;  %v3339_v45 = vpop.eup %3338 }
 0x533   : >> { %v1034_v48 = vadd.f32 %v3105_v38, %v4251_v59  ;;  %v1024_v46 = vpop.f32.mrb[7].mxu1  ;;  %v3341_v26 = vpop.eup %3340 }
 0x534   : >> { %v1033_v35 = vadd.f32 %v1024_v46, %v4253_v43  ;;  %v2298_v46 = vmul.f32 1.442695, %v2295_v32 }
 0x535   : >> { %v4264_v58 = vmul.f32 %v4258_v37, %v1034_v48 }
 0x536   : >> { %v3110_v52 = vpop.f32.mrb[8].mxu1  ;;  %v4267_v53 = vmul.f32 %v4261_v50, %v1033_v35  ;;  %3342 = vpow2.f32 %v2298_v46 }
 0x537   : >> { %v1139_v29 = vpop.f32.mrb[9].mxu1  ;;  %3344 = vpow2.f32 %v2296_v31  ;;  %v947_v31 = vsel %vm838_vm8, %v4034_v24, 0.0 }
 0x538   : >> { %945 = vadd.xlane.f32.xlu1 %v944_v56 }
 0x53a   : >> { %v3120_v36 = vpop.f32.mrb[10].mxu1 }
 0x53b   : >> { %v1428_v38 = vmul.f32 %v3335_v47, %v3120_v36  ;;  %v1418_v48 = vpop.f32.mrb[11].mxu1 }
 0x53c   : >> { %v1427_v35 = vmul.f32 %v3337_v51, %v1418_v48  ;;  %v1649_v48 = vpop.permute.xlu0 %1648 }
 0x53e   : >> { %v3130_v40 = vpop.f32.mrb[12].mxu1 }
 0x53f   : >> { %v1617_v0 = vpop.f32.mrb[13].mxu1 }
 0x540   : >> { %v3343_v4 = vpop.eup %3342 }
 0x541   : >> { %v3345_v2 = vpop.eup %3344 }
 0x542   : >> { %v3140_v22 = vpop.f32.mrb[14].mxu1 }
 0x543   : >> { %v1908_v33 = vmul.f32 %v3339_v45, %v3140_v22  ;;  %v1898_v41 = vpop.f32.mrb[15].mxu1  ;;  %v1920_v22 = vpop.permute.xlu0 %1919 }
 0x544   : >> { %v1907_v39 = vmul.f32 %v3341_v26, %v1898_v41 }
 0x546   : >> { %v3150_v30 = vpop.f32.mrb[16].mxu1 }
 0x547   : >> { %v2097_v56 = vpop.f32.mrb[17].mxu1  ;;  %v2129_v46 = vpop.permute.xlu0 %2128 }
 0x54a   : >> { %v3160_v1 = vpop.f32.mrb[18].mxu1 }
 0x54b   : >> { %v4275_v47 = vmul.f32 %v3343_v4, %v3160_v1  ;;  %v2378_v32 = vpop.f32.mrb[19].mxu1 }
 0x54c   : >> { %v2387_v36 = vmul.f32 %v3345_v2, %v2378_v32  ;;  %v1431_v2 = vsel %vm838_vm8, %v1427_v35, 0.0 }
 0x54e   : >> { %v4277_v21 = vpop.f32.mrb[20].mxu1 }
 0x54f   : >> { %v2577_v51 = vpop.f32.mrb[21].mxu1  ;;  %948 = vadd.xlane.f32.xlu0 %v947_v31 }
 0x57e   : >> { %v1153_v41 = vpop.permute.xlu0 %1152 }
 0x57f   : >> { %v1157_v45 = vmul.f32 %v3110_v52, %v1153_v41 }
 0x581   : >> { %v1163_v26 = vsel %vm838_vm8, %v1157_v45, 0.0 }
 0x582   : >> { %v1151_v3 = vpop.permute.xlu1 %1150  ;;  %1164 = vadd.xlane.f32.xlu0 %v1163_v26 }
 0x583   : >> { %v1156_v1 = vmul.f32 %v1151_v3, %v1139_v29  ;;  %v1434_v3 = vsel %vm838_vm8, %v1428_v38, 0.0 }
 0x585   : >> { %3113 = vmatprep.mubr.msk.f32.mxu0 %vm838_vm8, %v1156_v1  ;;  %v1160_v4 = vsel %vm838_vm8, %v1156_v1, 0.0  ;;  %v2394_v1 = vsel %vm838_vm8, %v4275_v47, 0.0 }
 0x586   : >> { %1432 = vadd.xlane.f32.xlu0 %v1431_v2  ;;  %3114 = vmatmul.mubr.msk.f32.vlgmr.msra.gmra.mrb[2].mxu0 %vm838_vm8, %v1157_v45  ;;  %v2400_v41 = vpop.permute.xlu1 %2399 }
 0x587   : >> { %3122 = vmatpush3.msra.mxu0 %v4231_v62  ;;  %1161 = vadd.xlane.f32.xlu1 %v1160_v4  ;;  %v1911_v62 = vsel %vm838_vm8, %v1907_v39, 0.0  ;;  %v1328_v4 = vsub.f32 -1e+30, %v4170_v61 }
 0x588   : >> { %3123 = vmatprep.mubr.msk.f32.mxu0 %vm838_vm8, %v1427_v35  ;;  %3131 = vmatprep.subr.mxu0 %v1649_v48  ;;  %v1629_v24 = vpop.permute.xlu0 %1628 }
 0x589   : >> { %v1634_v52 = vmul.f32 %v1629_v24, %v1617_v0  ;;  %v1330_v24 = vmul.f32 1.442695, %v1328_v4 }
 0x58a   : >> { %3124 = vmatmul.mubr.msk.f32.vlgmr.msra.gmra.mrb[4].mxu0 %vm838_vm8, %v1428_v38 }
 0x58b   : >> { %3132 = vmatpush3.msra.mxu0 %v1649_v48  ;;  %1435 = vadd.xlane.f32.xlu1 %v1434_v3  ;;  %v1638_v29 = vsel %vm838_vm8, %v1634_v52, 0.0  ;;  %3346 = vpow2.f32 %v1330_v24 }
 0x58c   : >> { %3133 = vmatprep.mubr.msk.f32.mxu0 %vm838_vm8, %v1634_v52  ;;  %3141 = vmatprep.subr.mxu0 %v1920_v22  ;;  %v1329_v52 = vsub.f32 -1e+30, %v4184_v25 }
 0x58d   : >> { %1639 = vadd.xlane.f32.xlu0 %v1638_v29  ;;  %v1808_v29 = vsub.f32 -1e+30, %v4175_v28 }
 0x58e   : >> { %v1631_v32 = vpop.permute.xlu0 %1630  ;;  %v1332_v3 = vmul.f32 1.442695, %v1329_v52 }
 0x58f   : >> { %v1635_v31 = vmul.f32 %v3130_v40, %v1631_v32  ;;  %v1914_v40 = vsel %vm838_vm8, %v1908_v33, 0.0  ;;  %v4566_v32 = vsub.f32 %v4184_v25, %v4189_v44 }
 0x590   : >> { %3348 = vpow2.f32 %v1332_v3 }
 0x591   : >> { %1912 = vadd.xlane.f32.xlu0 %v1911_v62  ;;  %3134 = vmatmul.mubr.msk.f32.vlgmr.msra.gmra.mrb[6].mxu0 %vm838_vm8, %v1635_v31  ;;  %v1641_v0 = vsel %vm838_vm8, %v1635_v31, 0.0  ;;  %v1539_v62 = vmul.f32 1.442695, %v4566_v32 }
 0x592   : >> { %3142 = vmatpush3.msra.mxu0 %v1920_v22  ;;  %v2109_v35 = vpop.permute.xlu0 %2108  ;;  %3143 = vmatprep.mubr.msk.f32.mxu0 %vm838_vm8, %v1907_v39  ;;  %v2391_v39 = vsel %vm838_vm8, %v2387_v36, 0.0 }
 0x593   : >> { %v2114_v38 = vmul.f32 %v2109_v35, %v2097_v56  ;;  %3151 = vmatprep.subr.mxu0 %v2129_v46  ;;  %1642 = vadd.xlane.f32.xlu1 %v1641_v0  ;;  %v1810_v0 = vmul.f32 1.442695, %v1808_v29  ;;  %v1738_v35 = vsub.f32 0.0, %v4173_v63 }
 0x595   : >> { %3144 = vmatmul.mubr.msk.f32.vlgmr.msra.gmra.mrb[8].mxu0 %vm838_vm8, %v1908_v33  ;;  %v2118_v48 = vsel %vm838_vm8, %v2114_v38, 0.0 }
 0x596   : >> { %3152 = vmatpush3.msra.mxu0 %v2129_v46  ;;  %v2111_v45 = vpop.permute.xlu0 %2110  ;;  %2119 = vadd.xlane.f32.xlu0 %v2118_v48 }
 0x597   : >> { %v2115_v26 = vmul.f32 %v3150_v30, %v2111_v45  ;;  %3153 = vmatprep.mubr.msk.f32.mxu0 %vm838_vm8, %v2114_v38  ;;  %1915 = vadd.xlane.f32.xlu1 %v1914_v40  ;;  %v3347_v38 = vpop.eup %3346  ;;  %v1740_v45 = vmul.f32 1.442695, %v1738_v35  ;;  %v4567_v40 = vsub.f32 %v4175_v28, %v4182_v34 }
 0x598   : >> { %3161 = vmatprep.subr.mxu0 %v2400_v41 }
 0x599   : >> { %3154 = vmatmul.mubr.msk.f32.vlgmr.msra.gmra.mrb[10].mxu0 %vm838_vm8, %v2115_v26  ;;  %v2121_v56 = vsel %vm838_vm8, %v2115_v26, 0.0  ;;  %v2017_v25 = vmul.f32 1.442695, %v4567_v40  ;;  %v4333_v26 = vmul.f32 0.0, %v3347_v38  ;;  %v4569_v38 = vsub.f32 %v4198_v55, %v4204_v60 }
 0x59a   : >> { %v2589_v22 = vpop.permute.xlu0 %2588  ;;  %2392 = vadd.xlane.f32.xlu0 %v2391_v39  ;;  %3163 = vmatprep.mubr.msk.f32.mxu0 %vm838_vm8, %v2387_v36 }
 0x59b   : >> { %v2594_v46 = vmul.f32 %v2589_v22, %v2577_v51  ;;  %2122 = vadd.xlane.f32.xlu1 %v2121_v56  ;;  %3162 = vmatpush3.msra.mxu0 %v2400_v41  ;;  %v2288_v56 = vsub.f32 -1e+30, %v4198_v55  ;;  %v1739_v22 = vsub.f32 0.0, %v4189_v44  ;;  %v2289_v44 = vsub.f32 -1e+30, %v4220_v23 }
 0x59d   : >> { %3164 = vmatmul.mubr.msk.f32.vlgmr.msra.gmra.mrb[12].mxu0 %vm838_vm8, %v4275_v47  ;;  %v2598_v33 = vsel %vm838_vm8, %v2594_v46, 0.0  ;;  %v4565_v47 = vsub.f32 %v4170_v61, %v4173_v63  ;;  %v1809_v61 = vsub.f32 -1e+30, %v4200_v57  ;;  %v3349_v63 = vpop.eup %3348  ;;  %v1742_v4 = vmul.f32 1.442695, %v1739_v22 }
 0x59e   : >> { %v2591_v30 = vpop.permute.xlu0 %2590  ;;  %2599 = vadd.xlane.f32.xlu0 %v2598_v33  ;;  %3173 = vmatprep.mubr.msk.f32.mxu0 %vm838_vm8, %v2594_v46  ;;  %v2292_v35 = vmul.f32 1.442695, %v2289_v44 }
 0x59f   : >> { %v2595_v2 = vmul.f32 %v4277_v21, %v2591_v30  ;;  %2395 = vadd.xlane.f32.xlu1 %v2394_v1  ;;  %v1537_v21 = vmul.f32 1.442695, %v4565_v47  ;;  %v1812_v30 = vmul.f32 1.442695, %v1809_v61  ;;  %v2497_v61 = vmul.f32 1.442695, %v4569_v38 }
 0x5a1   : >> { %v2601_v36 = vsel %vm838_vm8, %v2595_v2, 0.0  ;;  %3350 = vpow2.f32 %v1537_v21  ;;  %v4568_v21 = vsub.f32 %v4200_v57, %v4207_v42 }
 0x5a2   : >> { %v2609_v51 = vpop.permute.xlu0 %2608  ;;  %3352 = vpow2.f32 %v1539_v62 }
 0x5a3   : >> { %2602 = vadd.xlane.f32.xlu1 %v2601_v36  ;;  %3171 = vmatprep.subr.mxu0 %v2609_v51  ;;  %3354 = vpow2.f32 %v1810_v0  ;;  %v4344_v36 = vmul.f32 0.0, %v3349_v63  ;;  %v2019_v29 = vmul.f32 1.442695, %v4568_v21 }
 0x5a4   : >> { %3172 = vmatpush3.msra.mxu0 %v2609_v51  ;;  %3356 = vpow2.f32 %v1740_v45  ;;  %v2290_v51 = vmul.f32 1.442695, %v2288_v56  ;;  %v2219_v45 = vsub.f32 0.0, %v4207_v42 }
 0x5a5   : >> { %3174 = vmatmul.mubr.msk.f32.vlgmr.msra.gmra.mrb[14].mxu0 %vm838_vm8, %v2595_v2  ;;  %3358 = vpow2.f32 %v2017_v25  ;;  %v2218_v2 = vsub.f32 0.0, %v4182_v34 }
 0x5a6   : >> { %3360 = vpow2.f32 %v1812_v30  ;;  %v2222_v55 = vmul.f32 1.442695, %v2219_v45 }
 0x5a7   : >> { %v2220_v62 = vmul.f32 1.442695, %v2218_v2  ;;  %3362 = vpow2.f32 %v2290_v51  ;;  %v4570_v2 = vsub.f32 %v4220_v23, %v4223_v49 }
 0x5a8   : >> { %3364 = vpow2.f32 %v1742_v4 }
 0x5a9   : >> { %3366 = vpow2.f32 %v2019_v29  ;;  %v2499_v51 = vmul.f32 1.442695, %v4570_v2 }
 0x5aa   : >> { %3368 = vpow2.f32 %v2220_v62 }
 0x5ab   : >> { %v4340_v1 = vpop.eup %3350  ;;  %3370 = vpow2.f32 %v2292_v35 }
 0x5ac   : >> { %v4347_v52 = vpop.eup %3352  ;;  %3372 = vpow2.f32 %v2497_v61 }
 0x5ad   : >> { %v3355_v47 = vpop.eup %3354  ;;  %3374 = vpow2.f32 %v2222_v55 }
 0x5ae   : >> { %v4358_v25 = vmul.f32 0.0, %v3355_v47  ;;  %3376 = vpow2.f32 %v2499_v51 }
 0x5c5   : >> { %v4327_v41 = vpop.xlane.xlu1 %945 }
 0x5dc   : >> { %v4322_v31 = vpop.xlane.xlu0 %948 }
 0x60f   : >> { %v4325_v48 = vpop.xlane.xlu0 %1164 }
 0x613   : >> { %v1433_v39 = vpop.xlane.xlu0 %1432 }
 0x614   : >> { %v1437_v46 = vadd.f32 %v1433_v39, %v4333_v26  ;;  %v4338_v33 = vpop.xlane.xlu1 %1161  ;;  %v4360_v39 = vpop.eup %3356 }
 0x615   : >> { %v4365_v22 = vpop.eup %3358 }
 0x616   : >> { %v1636_v28 = vmul.f32 %v4340_v1, %v1437_v46  ;;  %v2698_v46 = vsub.f32 0.0, %v4204_v60 }
 0x618   : >> { %v1436_v24 = vpop.xlane.xlu1 %1435 }
 0x619   : >> { %v1438_v3 = vadd.f32 %v1436_v24, %v4344_v36 }
 0x61a   : >> { %v1640_v32 = vpop.xlane.xlu0 %1639 }
 0x61b   : >> { %v1644_v34 = vadd.f32 %v1640_v32, %v1636_v28  ;;  %v1637_v0 = vmul.f32 %v4347_v52, %v1438_v3  ;;  %v3361_v28 = vpop.eup %3360  ;;  %v2700_v3 = vmul.f32 1.442695, %v2698_v46  ;;  %v2699_v32 = vsub.f32 0.0, %v4223_v49 }
 0x61c   : >> { %v3363_v44 = vpop.eup %3362  ;;  %v4374_v21 = vmul.f32 0.0, %v3361_v28 }
 0x61d   : >> { %v1734_v40 = vand.u32 2147483647, %v1644_v34  ;;  %v4376_v29 = vpop.eup %3364  ;;  %v4384_v61 = vmul.f32 0.0, %v3363_v44  ;;  %3378 = vpow2.f32 %v2700_v3  ;;  %v2702_v46 = vmul.f32 1.442695, %v2699_v32 }
 0x61e   : >> { %v1913_v57 = vpop.xlane.xlu0 %1912  ;;  %v4382_v38 = vpop.eup %3366 }
 0x61f   : >> { %v4362_v56 = vmul.f32 0.35355338, %v1734_v40  ;;  %v1917_v63 = vadd.f32 %v1913_v57, %v4358_v25  ;;  %v4386_v45 = vpop.eup %3368  ;;  %3380 = vpow2.f32 %v2702_v46  ;;  %v1257_v46 = vsub.f32 0.0, %v4166_v54 }
 0x620   : >> { %v1643_v4 = vpop.xlane.xlu1 %1642 }
 0x621   : >> { %v1744_v42 = vmax.f32 %v4362_v56, %v4360_v39  ;;  %v2116_v30 = vmul.f32 %v4365_v22, %v1917_v63  ;;  %v1645_v24 = vadd.f32 %v1643_v4, %v1637_v0  ;;  %v3371_v63 = vpop.eup %3370 }
 0x622   : >> { %v4394_v2 = vpop.eup %3372 }
 0x623   : >> { %v1735_v47 = vand.u32 2147483647, %v1645_v24  ;;  %v2120_v60 = vpop.xlane.xlu0 %2119  ;;  %v3375_v32 = vpop.eup %3374 }
 0x624   : >> { %v2124_v62 = vadd.f32 %v2120_v60, %v2116_v30  ;;  %v1916_v34 = vpop.xlane.xlu1 %1915 }
 0x625   : >> { %v4379_v35 = vmul.f32 0.35355338, %v1735_v47  ;;  %v1918_v23 = vadd.f32 %v1916_v34, %v4374_v21  ;;  %v4399_v47 = vmul.f32 0.0, %v3371_v63 }
 0x626   : >> { %v2214_v0 = vand.u32 2147483647, %v2124_v62 }
 0x627   : >> { %v1745_v40 = vmax.f32 %v4379_v35, %v4376_v29  ;;  %v2393_v57 = vpop.xlane.xlu0 %2392  ;;  %v2117_v49 = vmul.f32 %v4382_v38, %v1918_v23  ;;  %v4402_v35 = vpop.eup %3376 }
 0x628   : >> { %v4391_v55 = vmul.f32 0.35355338, %v2214_v0  ;;  %v2397_v30 = vadd.f32 %v2393_v57, %v4384_v61  ;;  %v2123_v28 = vpop.xlane.xlu1 %2122  ;;  %v4408_v63 = vpop.eup %3378 }
 0x629   : >> { %v2125_v51 = vadd.f32 %v2123_v28, %v2117_v49  ;;  %v1258_v49 = vsub.f32 0.0, %v4161_v27  ;;  %v1259_v27 = vmul.f32 1.442695, %v1257_v46 }
 0x62a   : >> { %v2596_v24 = vmul.f32 %v4394_v2, %v2397_v30 }
 0x62b   : >> { %v2215_v44 = vand.u32 2147483647, %v2125_v51  ;;  %v2600_v3 = vpop.xlane.xlu0 %2599  ;;  %v951_v51 = vadd.f32 %v4322_v31, %v4251_v59 }
 0x62c   : >> { %v2604_v60 = vadd.f32 %v2600_v3, %v2596_v24  ;;  %v2396_v29 = vpop.xlane.xlu1 %2395 }
 0x62d   : >> { %v2217_v62 = vmul.f32 0.35355338, %v2215_v44  ;;  %v2398_v34 = vadd.f32 %v2396_v29, %v4399_v47  ;;  %v950_v44 = vadd.f32 %v4327_v41, %v4253_v43  ;;  %v1261_v29 = vmul.f32 1.442695, %v1258_v49 }
 0x62e   : >> { %v2694_v23 = vand.u32 2147483647, %v2604_v60 }
 0x62f   : >> { %v2225_v0 = vmax.f32 %v2217_v62, %v3375_v32  ;;  %v2597_v57 = vmul.f32 %v4402_v35, %v2398_v34  ;;  %v1159_v32 = vmul.f32 %v4258_v37, %v951_v51  ;;  %v3381_v34 = vpop.eup %3380  ;;  %3382 = vpow2.f32 %v1261_v29 }
 0x630   : >> { %v4406_v30 = vmul.f32 0.35355338, %v2694_v23  ;;  %v2603_v28 = vpop.xlane.xlu1 %2602  ;;  %v1158_v23 = vmul.f32 %v4261_v50, %v950_v44  ;;  %3384 = vpow2.f32 %v1259_v27  ;;  %v1747_v50 = vadd.f32 1e-06, %v1745_v40 }
 0x631   : >> { %v2605_v24 = vadd.f32 %v2603_v28, %v2597_v57  ;;  %v1167_v54 = vadd.f32 %v4325_v48, %v1159_v32  ;;  %v1746_v48 = vadd.f32 1e-06, %v1744_v42 }
 0x632   : >> { %v2704_v3 = vmax.f32 %v4406_v30, %v4408_v63  ;;  %v1166_v59 = vadd.f32 %v4338_v33, %v1158_v23 }
 0x633   : >> { %v2695_v60 = vand.u32 2147483647, %v2605_v24  ;;  %v1254_v43 = vand.u32 2147483647, %v1167_v54 }
 0x634   : >> { %v1253_v31 = vand.u32 2147483647, %v1166_v59  ;;  %v2227_v59 = vadd.f32 1e-06, %v2225_v0 }
 0x635   : >> { %v2697_v62 = vmul.f32 0.35355338, %v2695_v60  ;;  %v1256_v41 = vmul.f32 0.35355338, %v1254_v43 }
 0x636   : >> { %v1255_v57 = vmul.f32 0.35355338, %v1253_v31 }
 0x637   : >> { %v2705_v4 = vmax.f32 %v2697_v62, %v3381_v34 }
 0x639   : >> { %v3383_v28 = vpop.eup %3382 }
 0x63a   : >> { %v3385_v49 = vpop.eup %3384  ;;  %v1264_v46 = vmax.f32 %v1256_v41, %v3383_v28 }
 0x63b   : >> { %v1263_v24 = vmax.f32 %v1255_v57, %v3385_v49 }
 0x63c   : >> { %v1266_v37 = vadd.f32 1e-06, %v1264_v46 }
 0x63d   : >> { %v1265_v51 = vadd.f32 1e-06, %v1263_v24 }
 0x63e   : >> { %3386 = vrcp.f32 %v1266_v37  ;;  %v2707_v37 = vadd.f32 1e-06, %v2705_v4 }
 0x63f   : >> { %3388 = vrcp.f32 %v1265_v51 }
 0x640   : >> { %3390 = vrcp.f32 %v1747_v50 }
 0x641   : >> { %3392 = vrcp.f32 %v1746_v48 }
 0x642   : >> { %3394 = vrcp.f32 %v2227_v59 }
 0x648   : >> { %v3387_v44 = vpop.eup %3386 }
 0x649   : >> { %v3389_v33 = vpop.eup %3388  ;;  %v1270_v32 = vmul.f32 0.35355338, %v3387_v44 }
 0x64a   : >> { %v1269_v34 = vmul.f32 0.35355338, %v3389_v33 }
 0x659   : >> { %v3115_v60 = vpop.f32.mrb[2].mxu0 }
 0x65a   : >> { %v1252_v29 = vadd.f32 %v3115_v60, %v4264_v58  ;;  %v1242_v27 = vpop.f32.mrb[3].mxu0  ;;  %v4571_v58 = vmax.f32 %v4391_v55, %v4386_v45 }
 0x65b   : >> { %v1251_v62 = vadd.f32 %v1242_v27, %v4267_v53 }
 0x65c   : >> { %v4426_v23 = vmul.f32 %v1270_v32, %v1252_v29  ;;  %v2226_v43 = vadd.f32 1e-06, %v4571_v58 }
 0x65d   : >> { %v3125_v54 = vpop.f32.mrb[4].mxu0  ;;  %v4428_v40 = vmul.f32 %v1269_v34, %v1251_v62 }
 0x65e   : >> { %v1524_v39 = vadd.f32 %v3125_v54, %v4344_v36  ;;  %v1514_v56 = vpop.f32.mrb[5].mxu0  ;;  %v1276_v42 = vsel %vm838_vm8, %v4426_v23, 0.0  ;;  %3396 = vrcp.f32 %v2226_v43  ;;  %v3391_v36 = vpop.eup %3390 }
 0x65f   : >> { %v1523_v31 = vadd.f32 %v1514_v56, %v4333_v26  ;;  %1277 = vadd.xlane.f32.xlu0 %v1276_v42  ;;  %v1273_v53 = vsel %vm838_vm8, %v4428_v40, 0.0  ;;  %v3393_v57 = vpop.eup %3392  ;;  %v1751_v45 = vmul.f32 0.35355338, %v3391_v36  ;;  %3398 = vrcp.f32 %v2707_v37 }
 0x660   : >> { %1274 = vadd.xlane.f32.xlu1 %v1273_v53  ;;  %v1647_v41 = vmul.f32 %v4347_v52, %v1524_v39  ;;  %v1750_v24 = vmul.f32 0.35355338, %v3393_v57  ;;  %v3395_v33 = vpop.eup %3394 }
 0x661   : >> { %v1646_v0 = vmul.f32 %v4340_v1, %v1523_v31  ;;  %v2706_v1 = vadd.f32 1e-06, %v2704_v3  ;;  %v2231_v32 = vmul.f32 0.35355338, %v3395_v33 }
 0x663   : >> { %3400 = vrcp.f32 %v2706_v1 }
 0x664   : >> { %v3135_v28 = vpop.f32.mrb[6].mxu0 }
 0x665   : >> { %v1733_v49 = vadd.f32 %v3135_v28, %v1647_v41  ;;  %v1723_v46 = vpop.f32.mrb[7].mxu0 }
 0x666   : >> { %v1732_v55 = vadd.f32 %v1723_v46, %v1646_v0 }
 0x667   : >> { %v4441_v26 = vmul.f32 %v1751_v45, %v1733_v49 }
 0x668   : >> { %v3145_v51 = vpop.f32.mrb[8].mxu0  ;;  %v4443_v50 = vmul.f32 %v1750_v24, %v1732_v55  ;;  %v3397_v29 = vpop.eup %3396 }
 0x669   : >> { %v2004_v52 = vadd.f32 %v3145_v51, %v4374_v21  ;;  %v1994_v44 = vpop.f32.mrb[9].mxu0  ;;  %v1757_v48 = vsel %vm838_vm8, %v4441_v26, 0.0  ;;  %v2230_v34 = vmul.f32 0.35355338, %v3397_v29  ;;  %v3399_v31 = vpop.eup %3398 }
 0x66a   : >> { %v2003_v60 = vadd.f32 %v1994_v44, %v4358_v25  ;;  %1758 = vadd.xlane.f32.xlu1 %v1757_v48  ;;  %v1754_v4 = vsel %vm838_vm8, %v4443_v50, 0.0  ;;  %v2711_v57 = vmul.f32 0.35355338, %v3399_v31 }
 0x66b   : >> { %1755 = vadd.xlane.f32.xlu0 %v1754_v4  ;;  %v2127_v27 = vmul.f32 %v4382_v38, %v2004_v52 }
 0x66c   : >> { %v3155_v30 = vpop.f32.mrb[10].mxu0  ;;  %v2126_v63 = vmul.f32 %v4365_v22, %v2003_v60 }
 0x66d   : >> { %v2213_v21 = vadd.f32 %v3155_v30, %v2127_v27  ;;  %v2203_v3 = vpop.f32.mrb[11].mxu0  ;;  %v3401_v53 = vpop.eup %3400 }
 0x66e   : >> { %v2212_v62 = vadd.f32 %v2203_v3, %v2126_v63  ;;  %v2710_v28 = vmul.f32 0.35355338, %v3401_v53 }
 0x66f   : >> { %v2233_v54 = vmul.f32 %v2231_v32, %v2213_v21 }
 0x670   : >> { %v3165_v25 = vpop.f32.mrb[12].mxu0  ;;  %v2232_v59 = vmul.f32 %v2230_v34, %v2212_v62 }
 0x671   : >> { %v2484_v39 = vadd.f32 %v3165_v25, %v4399_v47  ;;  %v2474_v56 = vpop.f32.mrb[13].mxu0  ;;  %v2237_v42 = vsel %vm838_vm8, %v2233_v54, 0.0 }
 0x672   : >> { %v2483_v38 = vadd.f32 %v2474_v56, %v4384_v61  ;;  %2238 = vadd.xlane.f32.xlu1 %v2237_v42  ;;  %v2234_v58 = vsel %vm838_vm8, %v2232_v59, 0.0 }
 0x673   : >> { %2235 = vadd.xlane.f32.xlu0 %v2234_v58  ;;  %v2607_v22 = vmul.f32 %v4402_v35, %v2484_v39 }
 0x674   : >> { %v2606_v43 = vmul.f32 %v4394_v2, %v2483_v38 }
 0x678   : >> { %v3175_v41 = vpop.f32.mrb[14].mxu0 }
 0x679   : >> { %v2693_v0 = vadd.f32 %v3175_v41, %v2607_v22  ;;  %v2683_v36 = vpop.f32.mrb[15].mxu0 }
 0x67a   : >> { %v2692_v47 = vadd.f32 %v2683_v36, %v2606_v43 }
 0x67b   : >> { %v2713_v49 = vmul.f32 %v2711_v57, %v2693_v0 }
 0x67c   : >> { %v2712_v46 = vmul.f32 %v2710_v28, %v2692_v47 }
 0x67d   : >> { %v2717_v61 = vsel %vm838_vm8, %v2713_v49, 0.0 }
 0x67e   : >> { %2718 = vadd.xlane.f32.xlu1 %v2717_v61  ;;  %v2714_v45 = vsel %vm838_vm8, %v2712_v46, 0.0 }
 0x67f   : >> { %2715 = vadd.xlane.f32.xlu0 %v2714_v45 }
 0x6ec   : >> { %v1278_v55 = vpop.xlane.xlu0 %1277 }
 0x6ed   : >> { %v1281_v35 = vmul.f32 0.125, %v1278_v55  ;;  %v1275_v24 = vpop.xlane.xlu1 %1274 }
 0x6ee   : >> { %v1280_v2 = vmul.f32 0.125, %v1275_v24 }
 0x6ef   : >> { %v1283_v37 = vsub.f32 %v4426_v23, %v1281_v35 }
 0x6f0   : >> { %v1282_v51 = vsub.f32 %v4428_v40, %v1280_v2 }
 0x6f1   : >> { %v1285_v1 = vmul.f32 %v1283_v37, %v1283_v37 }
 0x6f2   : >> { %v1284_v52 = vmul.f32 %v1282_v51, %v1282_v51 }
 0x6f3   : >> { %v1289_v44 = vsel %vm838_vm8, %v1285_v1, 0.0 }
 0x6f4   : >> { %1290 = vadd.xlane.f32.xlu1 %v1289_v44  ;;  %v1286_v48 = vsel %vm838_vm8, %v1284_v52, 0.0 }
 0x6f5   : >> { %1287 = vadd.xlane.f32.xlu0 %v1286_v48 }
 0x6f7   : >> { %v1759_v33 = vpop.xlane.xlu1 %1758 }
 0x6f8   : >> { %v1761_v60 = vmul.f32 0.125, %v1759_v33  ;;  %v1756_v4 = vpop.xlane.xlu0 %1755 }
 0x6f9   : >> { %v1760_v29 = vmul.f32 0.125, %v1756_v4 }
 0x6fa   : >> { %v4469_v27 = vsub.f32 %v4441_v26, %v1761_v60 }
 0x6fb   : >> { %v4472_v30 = vsub.f32 %v4443_v50, %v1760_v29 }
 0x6fc   : >> { %v1765_v23 = vmul.f32 %v4469_v27, %v4469_v27 }
 0x6fd   : >> { %v1764_v40 = vmul.f32 %v4472_v30, %v4472_v30 }
 0x6fe   : >> { %v1769_v63 = vsel %vm838_vm8, %v1765_v23, 0.0 }
 0x6ff   : >> { %1770 = vadd.xlane.f32.xlu1 %v1769_v63  ;;  %v2239_v21 = vpop.xlane.xlu1 %2238  ;;  %v1766_v3 = vsel %vm838_vm8, %v1764_v40, 0.0 }
 0x700   : >> { %v2241_v32 = vmul.f32 0.125, %v2239_v21  ;;  %v2236_v62 = vpop.xlane.xlu0 %2235  ;;  %1767 = vadd.xlane.f32.xlu0 %v1766_v3 }
 0x701   : >> { %v2240_v26 = vmul.f32 0.125, %v2236_v62 }
 0x702   : >> { %v4480_v34 = vsub.f32 %v2233_v54, %v2241_v32 }
 0x703   : >> { %v4482_v50 = vsub.f32 %v2232_v59, %v2240_v26 }
 0x704   : >> { %v2245_v25 = vmul.f32 %v4480_v34, %v4480_v34 }
 0x705   : >> { %v2244_v39 = vmul.f32 %v4482_v50, %v4482_v50 }
 0x706   : >> { %v2249_v56 = vsel %vm838_vm8, %v2245_v25, 0.0 }
 0x707   : >> { %2250 = vadd.xlane.f32.xlu1 %v2249_v56  ;;  %v2246_v42 = vsel %vm838_vm8, %v2244_v39, 0.0 }
 0x708   : >> { %2247 = vadd.xlane.f32.xlu0 %v2246_v42 }
 0x70b   : >> { %v2719_v38 = vpop.xlane.xlu1 %2718 }
 0x70c   : >> { %v2721_v58 = vmul.f32 0.125, %v2719_v38  ;;  %v2716_v22 = vpop.xlane.xlu0 %2715 }
 0x70d   : >> { %v2720_v43 = vmul.f32 0.125, %v2716_v22 }
 0x70e   : >> { %v2723_v54 = vsub.f32 %v2713_v49, %v2721_v58 }
 0x70f   : >> { %v2722_v59 = vsub.f32 %v2712_v46, %v2720_v43 }
 0x710   : >> { %v2725_v31 = vmul.f32 %v2723_v54, %v2723_v54 }
 0x711   : >> { %v2724_v53 = vmul.f32 %v2722_v59, %v2722_v59 }
 0x712   : >> { %v2729_v41 = vsel %vm838_vm8, %v2725_v31, 0.0 }
 0x713   : >> { %2730 = vadd.xlane.f32.xlu1 %v2729_v41  ;;  %v2726_v0 = vsel %vm838_vm8, %v2724_v53, 0.0 }
 0x714   : >> { %2727 = vadd.xlane.f32.xlu0 %v2726_v0 }
 0x781   : >> { %v1291_v36 = vpop.xlane.xlu1 %1290 }
 0x782   : >> { %v1293_v57 = vmul.f32 0.125, %v1291_v36  ;;  %v1288_v47 = vpop.xlane.xlu0 %1287 }
 0x783   : >> { %v1292_v28 = vmul.f32 0.125, %v1288_v47 }
 0x784   : >> { %v1295_v61 = vadd.f32 1e-05, %v1293_v57 }
 0x785   : >> { %v1294_v45 = vadd.f32 1e-05, %v1292_v28 }
 0x786   : >> { %3402 = vrsqrt.f32 %v1295_v61 }
 0x787   : >> { %3404 = vrsqrt.f32 %v1294_v45 }
 0x78c   : >> { %v1771_v49 = vpop.xlane.xlu1 %1770 }
 0x78d   : >> { %v1773_v46 = vmul.f32 0.125, %v1771_v49  ;;  %v1768_v55 = vpop.xlane.xlu0 %1767 }
 0x78e   : >> { %v1772_v24 = vmul.f32 0.125, %v1768_v55 }
 0x78f   : >> { %v1775_v52 = vadd.f32 1e-05, %v1773_v46 }
 0x790   : >> { %v3403_v35 = vpop.eup %3402  ;;  %v1774_v48 = vadd.f32 1e-05, %v1772_v24 }
 0x791   : >> { %v3405_v2 = vpop.eup %3404  ;;  %v1299_v1 = vmul.f32 %v3403_v35, %v1283_v37  ;;  %3406 = vrsqrt.f32 %v1775_v52 }
 0x792   : >> { %v1298_v44 = vmul.f32 %v3405_v2, %v1282_v51  ;;  %3408 = vrsqrt.f32 %v1774_v48 }
 0x793   : >> { %1303 = vst.msk [vmem:[%s4494_s16 + $0x8] sm:$0xff] %vm838_vm8, %v1299_v1 }
 0x794   : >> { %1302 = vst.msk [vmem:[%s4494_s16] sm:$0xff] %vm838_vm8, %v1298_v44  ;;  %v2251_v33 = vpop.xlane.xlu1 %2250 }
 0x795   : >> { %v2253_v60 = vmul.f32 0.125, %v2251_v33  ;;  %v2248_v4 = vpop.xlane.xlu0 %2247 }
 0x796   : >> { %v2252_v29 = vmul.f32 0.125, %v2248_v4 }
 0x797   : >> { %v2255_v23 = vadd.f32 1e-05, %v2253_v60 }
 0x798   : >> { %v2254_v40 = vadd.f32 1e-05, %v2252_v29 }
 0x799   : >> { %3410 = vrsqrt.f32 %v2255_v23 }
 0x79a   : >> { %3412 = vrsqrt.f32 %v2254_v40 }
 0x79b   : >> { %v3407_v37 = vpop.eup %3406 }
 0x79c   : >> { %v3409_v63 = vpop.eup %3408  ;;  %v1779_v51 = vmul.f32 %v3407_v37, %v4469_v27 }
 0x79d   : >> { %v1778_v21 = vmul.f32 %v3409_v63, %v4472_v30 }
 0x79e   : >> { %2940 = vst.msk [vmem:[%s4494_s16 + $0x18] sm:$0xff] %vm838_vm8, %v1779_v51 }
 0x79f   : >> { %2939 = vst.msk [vmem:[%s4494_s16 + $0x10] sm:$0xff] %vm838_vm8, %v1778_v21 }
 0x7a0   : >> { %v2731_v3 = vpop.xlane.xlu1 %2730 }
 0x7a1   : >> { %v2733_v32 = vmul.f32 0.125, %v2731_v3  ;;  %v2728_v62 = vpop.xlane.xlu0 %2727 }
 0x7a2   : >> { %v2732_v26 = vmul.f32 0.125, %v2728_v62 }
 0x7a3   : >> { %v3411_v25 = vpop.eup %3410  ;;  %v2735_v39 = vadd.f32 1e-05, %v2733_v32 }
 0x7a4   : >> { %v3413_v56 = vpop.eup %3412  ;;  %v2259_v42 = vmul.f32 %v3411_v25, %v4480_v34  ;;  %v2734_v38 = vadd.f32 1e-05, %v2732_v26 }
 0x7a5   : >> { %v2258_v27 = vmul.f32 %v3413_v56, %v4482_v50  ;;  %3414 = vrsqrt.f32 %v2735_v39 }
 0x7a6   : >> { %2953 = vst.msk [vmem:[%s4494_s16 + $0x28] sm:$0xff] %vm838_vm8, %v2259_v42  ;;  %3416 = vrsqrt.f32 %v2734_v38 }
 0x7a7   : >> { %2952 = vst.msk [vmem:[%s4494_s16 + $0x20] sm:$0xff] %vm838_vm8, %v2258_v27 }
 0x7ad   : > { %362 = sbr.rel (!%p360_p2) target bundleno = 113 (0x71), region = 118 }
 0x7af   : >> { %v3415_v30 = vpop.eup %3414 }
 0x7b0   : >> { %v3417_v58 = vpop.eup %3416  ;;  %v2739_v22 = vmul.f32 %v3415_v30, %v2723_v54 }
 0x7b1   : >> { %v2738_v43 = vmul.f32 %v3417_v58, %v2722_v59 }
 0x7b2   : >> { %2966 = vst.msk [vmem:[%s4494_s16 + $0x38] sm:$0xff] %vm838_vm8, %v2739_v22 }
 0x7b3   : >> { %2965 = vst.msk [vmem:[%s4494_s16 + $0x30] sm:$0xff] %vm838_vm8, %v2738_v43 }
 0x7b4 PF: > { %p18_p7 = scmp.ge.s32.totalorder %s3627_s23, 4   ;;  %s4572_s18 = smov %s3542_s19 }
 0x7b5   : > { %s4573_s19 = smov %s3546_s20  ;;  %s4574_s20 = smov %s3637_s26 }
 0x7b6   : > { %s4575_s21 = smov %s3627_s23  ;;  %20 = sbr.rel (!%p18_p7) target bundleno = 5 (0x5), region = 129 }
 0x7bd   :  { %2768 = vsyncpa [#allocation3], 1 }
 0x7be   :  { %2770 = vsyncpa [#allocation3 + $0x1], 1 }
 0x7bf   :  { %2771 = vsyncpa [#allocation5], 1 }
 0x7c0   :  { %2773 = vsyncpa [#allocation5 + $0x1], 1 }

</bundles_post_ra>
